<compile_context>
chip_gen: v7x
topology: tpu7x:2x2x1
jax: 0.10.0
libtpu: 0.0.40
codegen_flags: <defaults>
</compile_context>

<pallas_src>
import functools
import math

import jax
import jax.numpy as jnp
from jax.experimental import pallas as pl
from jax.experimental.pallas import tpu as pltpu

# Small, module-consistent hyper-parameters.
NTOKEN  = 50
D_MODEL = 32
NHEAD   = 4
D_HID   = 64
NLAYERS = 2
MAX_LEN = 512
SEQ_LEN = 8
BATCH   = 2
LN_EPS  = 1e-5
NEG_INF = -1e30
LANES   = 128

VMEM_SPEC = pl.BlockSpec(memory_space=pltpu.MemorySpace.VMEM)


# ----------------------------- shared math ---------------------------------
def _layer_norm(x, gamma, beta, eps=LN_EPS):
    mu = jnp.mean(x, axis=-1, keepdims=True)
    var = jnp.mean((x - mu) ** 2, axis=-1, keepdims=True)
    return (x - mu) * jax.lax.rsqrt(var + eps) * gamma + beta


def _gelu_exact(x):
    return 0.5 * x * (1.0 + jax.lax.erf(x * (1.0 / math.sqrt(2.0))))


# ------------------------- weight-slab layout --------------------------------
def _slab_layout(d, d_hid):
    """Row ranges (per layer) inside the packed [rows, 128] f32 weight slab.

    Every block starts at lane 0 and at a sublane multiple of 8, so in-kernel
    static slices are cheap aligned loads."""
    assert d % 8 == 0 and d_hid % 8 == 0 and 3 * d <= LANES and d_hid <= LANES
    r = 0
    wqkv = (r, r + d);     r += d       # [d, 3d]
    wo   = (r, r + d);     r += d       # [d, d]
    w1   = (r, r + d);     r += d       # [d, d_hid]
    w2   = (r, r + d_hid); r += d_hid   # [d_hid, d]
    vec  = (r, r + 8);     r += 8       # 8 bias / LN rows (see _build_weight_slab)
    assert r % 8 == 0
    return dict(wqkv=wqkv, wo=wo, w1=w1, w2=w2, vec=vec, rows=r)


def _build_weight_slab(layers, d, d_hid):
    """Pack every per-layer parameter into one lane-padded f32 [L*rows, 128] slab."""
    lay = _slab_layout(d, d_hid)
    slab = jnp.zeros((lay['rows'] * len(layers), LANES), jnp.float32)
    for li, p in enumerate(layers):
        b = li * lay['rows']
        slab = slab.at[b + lay['wqkv'][0]:b + lay['wqkv'][1], 0:3 * d].set(p['wqkv'])
        slab = slab.at[b + lay['wo'][0]:  b + lay['wo'][1],   0:d].set(p['wo'])
        slab = slab.at[b + lay['w1'][0]:  b + lay['w1'][1],   0:d_hid].set(p['w1'])
        slab = slab.at[b + lay['w2'][0]:  b + lay['w2'][1],   0:d].set(p['w2'])
        vb = b + lay['vec'][0]
        slab = slab.at[vb + 0, 0:3 * d].set(p['bqkv'][0])
        slab = slab.at[vb + 1, 0:d].set(p['bo'][0])
        slab = slab.at[vb + 2, 0:d].set(p['g1'][0])
        slab = slab.at[vb + 3, 0:d].set(p['be1'][0])
        slab = slab.at[vb + 4, 0:d_hid].set(p['b1'][0])
        slab = slab.at[vb + 5, 0:d].set(p['b2'][0])
        slab = slab.at[vb + 6, 0:d].set(p['g2'][0])
        slab = slab.at[vb + 7, 0:d].set(p['be2'][0])
    return slab


def prepare_model(emb, layers, pe, seq_len, batch):
    """One-time (hoisted out of the per-call jit) kernel-ready array preparation."""
    V, D = emb.shape
    v_pad = max(LANES, ((V + LANES - 1) // LANES) * LANES)   # full 128-lane one-hot
    emb_pad = jnp.zeros((v_pad, D), jnp.float32).at[:V].set(emb)
    pe_bs = jnp.tile(pe[:seq_len], (batch, 1))               # [N, D], n = b*S + s
    wslab = _build_weight_slab(layers, D, D_HID)
    return emb_pad, pe_bs, wslab


# ------------------------------ fused kernel --------------------------------
def _fused_kernel(nlayers, nhead, d_hid, layout, act_ref, emb_ref, w_ref, o_ref):
    """Embedding + positional add + `nlayers` post-norm encoder layers, fully fused.

    act_ref [N, D+N+2] f32 : lanes 0:D = pe, D:D+N = additive attention bias,
                             D+N = token ids (as f32), D+N+1 = iv ids (as f32)
    emb_ref [128, D]   f32 : vocab-padded embedding table (row 0 = padding = 0)
    w_ref   [L*168,128]f32 : packed weight slab (see _slab_layout)
    o_ref   [N, D]     f32 : output rows, n = b*S + s
    """
    n, d = o_ref.shape
    vpad = emb_ref.shape[0]
    hd = d // nhead
    scale = 1.0 / math.sqrt(hd)
    bf16 = jnp.bfloat16

    act = act_ref[...]                                     # single [N, D+N+2] load
    pe = act[:, 0:d]
    bias = act[:, d:d + n]                                 # [N, N], stays f32
    tok = act[:, d + n:d + n + 1].astype(jnp.int32)        # exact small ints
    iv = act[:, d + n + 1:d + n + 2].astype(jnp.int32)

    # --- embedding lookup as a one-hot MXU matmul: Emb(data) + Emb(iv_data) ---
    vio = jax.lax.broadcasted_iota(jnp.int32, (n, vpad), 1)
    onehot = ((vio == tok).astype(jnp.float32) +
              (vio == iv).astype(jnp.float32))             # [N, 128]
    x = jnp.dot(onehot, emb_ref[...], preferred_element_type=jnp.float32) + pe

    for li in range(nlayers):
        base = li * layout['rows']
        wqkv = w_ref[base + layout['wqkv'][0]:base + layout['wqkv'][1], 0:3 * d]
        wo = w_ref[base + layout['wo'][0]:base + layout['wo'][1], 0:d]
        w1 = w_ref[base + layout['w1'][0]:base + layout['w1'][1], 0:d_hid]
        w2 = w_ref[base + layout['w2'][0]:base + layout['w2'][1], 0:d]
        vec = w_ref[base + layout['vec'][0]:base + layout['vec'][1], :]   # [8,128]
        bqkv = vec[0:1, 0:3 * d]
        bo = vec[1:2, 0:d]
        g1, be1 = vec[2:3, 0:d], vec[3:4, 0:d]
        b1 = vec[4:5, 0:d_hid]
        b2 = vec[5:6, 0:d]
        g2, be2 = vec[6:7, 0:d], vec[7:8, 0:d]

        # ---- fused QKV projection: one lane-dense [N,D] @ [D,3D] MXU push ----
        qkv = jnp.dot(x.astype(bf16), wqkv.astype(bf16),
                      preferred_element_type=jnp.float32) + bqkv          # [N, 3D]

        # ---- per-head attention: heads sliced by static lane ranges ----
        ctx_heads = []
        for h in range(nhead):
            qh = qkv[:, h * hd:(h + 1) * hd]                              # [N, hd]
            kh = qkv[:, d + h * hd:d + (h + 1) * hd]
            vh = qkv[:, 2 * d + h * hd:2 * d + (h + 1) * hd]
            s = jnp.einsum('ne,me->nm', qh, kh,
                           preferred_element_type=jnp.float32) * scale + bias
            m = jnp.max(s, axis=-1, keepdims=True)
            p = jnp.exp(s - m)
            # intentional ~1e-3 rel. deviation: EUP approximate reciprocal
            p = p * pl.reciprocal(jnp.sum(p, axis=-1, keepdims=True), approx=True)
            ctx_heads.append(jnp.dot(p, vh, preferred_element_type=jnp.float32))
        ctx = jnp.concatenate(ctx_heads, axis=-1)                         # [N, D]

        # ---- output projection: one [N,D] @ [D,D] MXU push ----
        attn = jnp.dot(ctx.astype(bf16), wo.astype(bf16),
                       preferred_element_type=jnp.float32) + bo
        h1 = _layer_norm(x + attn, g1, be1)

        # ---- feed-forward with exact (erf) GELU ----
        f = jnp.dot(h1.astype(bf16), w1.astype(bf16),
                    preferred_element_type=jnp.float32) + b1
        f = _gelu_exact(f)
        f = jnp.dot(f.astype(bf16), w2.astype(bf16),
                    preferred_element_type=jnp.float32) + b2
        x = _layer_norm(h1 + f, g2, be2)

    o_ref[...] = x


# ------------------------------ wrapper --------------------------------------
def int_transformer_forward(data, iv_data, mask, emb_pad, pe_bs, wslab,
                            global_pool=False):
    """data, iv_data: int32 [S, B] token ids; mask: bool [B, S] (True = pad).

    emb_pad / pe_bs / wslab come from prepare_model() (hoisted, call-invariant).
    Only tiny per-call packing (ids + attention bias) happens here.
    """
    S, B = data.shape
    D = emb_pad.shape[1]
    N = B * S
    layout = _slab_layout(D, D_HID)
    nlayers = wslab.shape[0] // layout['rows']

    # Per-call activation slab: pe | bias | tok | iv   -> single [N, D+N+2] DMA.
    tok = jnp.transpose(data).reshape(N, 1).astype(jnp.float32)      # n = b*S + s
    iv = jnp.transpose(iv_data).reshape(N, 1).astype(jnp.float32)
    key_bias = jnp.where(mask, jnp.float32(NEG_INF), jnp.float32(0.0))   # [B, S]
    blk = jnp.where(jnp.eye(B, dtype=bool), 0.0, NEG_INF).astype(jnp.float32)
    bias2d = jnp.broadcast_to(blk[:, None, :, None] + key_bias[None, None, :, :],
                              (B, S, B, S)).reshape(N, N)
    act = jnp.concatenate([pe_bs, bias2d, tok, iv], axis=1)          # [N, D+N+2]

    # Advisory cost estimate so XLA schedules the custom call sensibly.
    hd = D // NHEAD
    flops = 2 * N * emb_pad.shape[0] * D + nlayers * (
        2 * N * D * (3 * D) + 2 * 2 * NHEAD * N * N * hd
        + 2 * N * D * D + 2 * 2 * N * D * D_HID)
    transcendentals = nlayers * (NHEAD * N * N + N * D_HID + 4 * N)
    bytes_accessed = 4 * (act.size + emb_pad.size + wslab.size + N * D)

    # TODO(synk): if B*S grows to hundreds of rows, add a row-tile grid with
    # dimension_semantics=("parallel",) so v7x's second TensorCore is used.
    out_flat = pl.pallas_call(
        functools.partial(_fused_kernel, nlayers, NHEAD, D_HID, layout),
        out_shape=jax.ShapeDtypeStruct((N, D), jnp.float32),
        in_specs=[VMEM_SPEC, VMEM_SPEC, VMEM_SPEC],
        out_specs=VMEM_SPEC,
        cost_estimate=pl.CostEstimate(flops=int(flops),
                                      transcendentals=int(transcendentals),
                                      bytes_accessed=int(bytes_accessed)),
    )(act, emb_pad, wslab)

    x = out_flat.reshape(B, S, D)                   # module's final [B, S, D] layout
    if global_pool:
        return jnp.sum(x, axis=1)[0]
    return x


# --------------------------- parameters / reference --------------------------
def init_params(key):
    keys = jax.random.split(key, 1 + NLAYERS)
    emb = jax.random.uniform(keys[0], (NTOKEN, D_MODEL), jnp.float32, -0.1, 0.1)
    emb = emb.at[0].set(0.0)                     # padding_idx=0

    layers = []
    for li in range(NLAYERS):
        ks = jax.random.split(keys[1 + li], 8)
        D, H = D_MODEL, D_HID
        layers.append(dict(
            wqkv=0.05 * jax.random.normal(ks[0], (D, 3 * D), jnp.float32),
            bqkv=0.02 * jax.random.normal(ks[1], (1, 3 * D), jnp.float32),
            wo=0.05 * jax.random.normal(ks[2], (D, D), jnp.float32),
            bo=0.02 * jax.random.normal(ks[3], (1, D), jnp.float32),
            g1=jnp.ones((1, D), jnp.float32),
            be1=jnp.zeros((1, D), jnp.float32),
            w1=0.05 * jax.random.normal(ks[4], (D, H), jnp.float32),
            b1=0.02 * jax.random.normal(ks[5], (1, H), jnp.float32),
            w2=0.05 * jax.random.normal(ks[6], (H, D), jnp.float32),
            b2=0.02 * jax.random.normal(ks[7], (1, D), jnp.float32),
            g2=jnp.ones((1, D), jnp.float32),
            be2=jnp.zeros((1, D), jnp.float32),
        ))

    # PositionalEncoding buffer: pe[pos, 0::2] = sin, pe[pos, 1::2] = cos.
    pos = jnp.arange(MAX_LEN + 1, dtype=jnp.float32)[:, None]
    div = jnp.exp(jnp.arange(0, D_MODEL, 2, dtype=jnp.float32) *
                  (-math.log(10000.0) / D_MODEL))
    pe = jnp.stack([jnp.sin(pos * div), jnp.cos(pos * div)],
                   axis=-1).reshape(MAX_LEN + 1, D_MODEL)
    return emb, layers, pe


def _encoder_layer_math(x, bias, wqkv, bqkv, wo, bo,
                        g1, be1, w1, b1, w2, b2, g2, be2, *, nhead):
    """Pure-JAX reference: one post-norm TransformerEncoderLayer, x: [B,S,D]."""
    B, S, D = x.shape
    hd = D // nhead
    qkv = jnp.einsum('bsd,de->bse', x, wqkv) + bqkv
    q, k, v = qkv[:, :, :D], qkv[:, :, D:2 * D], qkv[:, :, 2 * D:]
    scale = 1.0 / math.sqrt(hd)
    bias_b = bias[:, None, :]
    heads = []
    for h in range(nhead):
        sl = slice(h * hd, (h + 1) * hd)
        s = jnp.einsum('bqe,bke->bqk', q[:, :, sl], k[:, :, sl]) * scale + bias_b
        m = jnp.max(s, axis=-1, keepdims=True)
        p = jnp.exp(s - m)
        p = p / jnp.sum(p, axis=-1, keepdims=True)
        heads.append(jnp.einsum('bqk,bke->bqe', p, v[:, :, sl]))
    attn = jnp.einsum('bsd,de->bse', jnp.concatenate(heads, axis=-1), wo) + bo
    h1 = _layer_norm(x + attn, g1, be1)
    f = jnp.einsum('bsd,dh->bsh', h1, w1) + b1
    f = _gelu_exact(f)
    f = jnp.einsum('bsh,hd->bsd', f, w2) + b2
    return _layer_norm(h1 + f, g2, be2)


def reference_forward(data, iv_data, mask, emb, layers, pe):
    S, B = data.shape
    x = jnp.transpose(emb[data] + emb[iv_data], (1, 0, 2)) + pe[:S][None]
    bias = jnp.where(mask, jnp.float32(NEG_INF), jnp.float32(0.0))
    for p in layers:
        x = _encoder_layer_math(
            x, bias, p['wqkv'], p['bqkv'], p['wo'], p['bo'],
            p['g1'], p['be1'], p['w1'], p['b1'], p['w2'], p['b2'],
            p['g2'], p['be2'], nhead=NHEAD)
    return x


# --------------------------------- main ---------------------------------------
if __name__ == "__main__":
    key = jax.random.PRNGKey(0)
    k_param, k_data, k_iv = jax.random.split(key, 3)

    emb, layers, pe = init_params(k_param)

    data = jax.random.randint(k_data, (SEQ_LEN, BATCH), 1, NTOKEN, dtype=jnp.int32)
    iv_data = jax.random.randint(k_iv, (SEQ_LEN, BATCH), 0, NTOKEN, dtype=jnp.int32)
    # key padding mask [B, S]: True = padded (last two keys of batch 1 masked)
    mask = jnp.zeros((BATCH, SEQ_LEN), dtype=bool).at[1, 6:].set(True)

    # One-time, hoisted preparation of kernel-ready constant slabs.
    emb_pad, pe_bs, wslab = prepare_model(emb, layers, pe, SEQ_LEN, BATCH)

    fwd = jax.jit(int_transformer_forward)
    out = jax.block_until_ready(fwd(data, iv_data, mask, emb_pad, pe_bs, wslab))

    ref = jax.block_until_ready(
        reference_forward(data, iv_data, mask, emb, layers, pe))

    assert out.shape == (BATCH, SEQ_LEN, D_MODEL)
    assert bool(jnp.allclose(out, ref, atol=2e-2, rtol=2e-2)), \
        "Pallas output does not match JAX reference"
    print("KERNEL_OK")
</pallas_src>

<mosaic_0001>
module attributes {stable_mosaic.version = 11 : i64} {
  func.func @_fused_kernel(%arg0: memref<16x50xf32, #tpu.memory_space<vmem>>, %arg1: memref<128x32xf32, #tpu.memory_space<vmem>>, %arg2: memref<336x128xf32, #tpu.memory_space<vmem>>, %arg3: memref<16x32xf32, #tpu.memory_space<vmem>>) attributes {dimension_semantics = [], scalar_prefetch = 0 : i64, scratch_operands = 0 : i64, tpu.core_type = #tpu.core_type<tc>} {
    %c0 = arith.constant 0 : index
    %c0_0 = arith.constant 0 : index
    %0 = vector.load %arg0[%c0, %c0_0] : memref<16x50xf32, #tpu.memory_space<vmem>>, vector<16x50xf32>
    %1 = vector.extract_strided_slice %0 {offsets = [0, 0], sizes = [16, 32], strides = [1, 1]} : vector<16x50xf32> to vector<16x32xf32>
    %2 = vector.extract_strided_slice %0 {offsets = [0, 32], sizes = [16, 16], strides = [1, 1]} : vector<16x50xf32> to vector<16x16xf32>
    %3 = vector.extract_strided_slice %0 {offsets = [0, 48], sizes = [16, 1], strides = [1, 1]} : vector<16x50xf32> to vector<16x1xf32>
    %4 = arith.fptosi %3 : vector<16x1xf32> to vector<16x1xi32>
    %5 = vector.extract_strided_slice %0 {offsets = [0, 49], sizes = [16, 1], strides = [1, 1]} : vector<16x50xf32> to vector<16x1xf32>
    %6 = arith.fptosi %5 : vector<16x1xf32> to vector<16x1xi32>
    %7 = tpu.iota {dimensions = array<i32: 1>} : vector<16x128xi32>
    %8 = vector.broadcast %4 : vector<16x1xi32> to vector<16x128xi32>
    %9 = arith.cmpi eq, %7, %8 : vector<16x128xi32>
    %10 = arith.extui %9 : vector<16x128xi1> to vector<16x128xi32>
    %11 = arith.sitofp %10 : vector<16x128xi32> to vector<16x128xf32>
    %12 = vector.broadcast %6 : vector<16x1xi32> to vector<16x128xi32>
    %13 = arith.cmpi eq, %7, %12 : vector<16x128xi32>
    %14 = arith.extui %13 : vector<16x128xi1> to vector<16x128xi32>
    %15 = arith.sitofp %14 : vector<16x128xi32> to vector<16x128xf32>
    %16 = arith.addf %11, %15 : vector<16x128xf32>
    %c0_1 = arith.constant 0 : index
    %c0_2 = arith.constant 0 : index
    %17 = vector.load %arg1[%c0_1, %c0_2] : memref<128x32xf32, #tpu.memory_space<vmem>>, vector<128x32xf32>
    %cst = arith.constant dense<0.000000e+00> : vector<16x32xf32>
    %18 = tpu.matmul %16, %17, %cst {dimension_numbers = #tpu.dot_dimension_numbers<[1], [0], [0], [1], [0, 0, 1, 1], [], []>} : vector<16x128xf32>, vector<128x32xf32>, vector<16x32xf32> -> vector<16x32xf32>
    %19 = arith.addf %18, %1 : vector<16x32xf32>
    %c0_3 = arith.constant 0 : index
    %c0_4 = arith.constant 0 : index
    %20 = vector.load %arg2[%c0_3, %c0_4] : memref<336x128xf32, #tpu.memory_space<vmem>>, vector<32x96xf32>
    %c32 = arith.constant 32 : index
    %c0_5 = arith.constant 0 : index
    %21 = vector.load %arg2[%c32, %c0_5] : memref<336x128xf32, #tpu.memory_space<vmem>>, vector<32x32xf32>
    %c64 = arith.constant 64 : index
    %c0_6 = arith.constant 0 : index
    %22 = vector.load %arg2[%c64, %c0_6] : memref<336x128xf32, #tpu.memory_space<vmem>>, vector<32x64xf32>
    %c96 = arith.constant 96 : index
    %c0_7 = arith.constant 0 : index
    %23 = vector.load %arg2[%c96, %c0_7] : memref<336x128xf32, #tpu.memory_space<vmem>>, vector<64x32xf32>
    %c160 = arith.constant 160 : index
    %c0_8 = arith.constant 0 : index
    %24 = vector.load %arg2[%c160, %c0_8] : memref<336x128xf32, #tpu.memory_space<vmem>>, vector<8x128xf32>
    %25 = vector.extract_strided_slice %24 {offsets = [0, 0], sizes = [1, 96], strides = [1, 1]} : vector<8x128xf32> to vector<1x96xf32>
    %26 = vector.extract_strided_slice %24 {offsets = [1, 0], sizes = [1, 32], strides = [1, 1]} : vector<8x128xf32> to vector<1x32xf32>
    %27 = vector.extract_strided_slice %24 {offsets = [2, 0], sizes = [1, 32], strides = [1, 1]} : vector<8x128xf32> to vector<1x32xf32>
    %28 = vector.extract_strided_slice %24 {offsets = [3, 0], sizes = [1, 32], strides = [1, 1]} : vector<8x128xf32> to vector<1x32xf32>
    %29 = vector.extract_strided_slice %24 {offsets = [4, 0], sizes = [1, 64], strides = [1, 1]} : vector<8x128xf32> to vector<1x64xf32>
    %30 = vector.extract_strided_slice %24 {offsets = [5, 0], sizes = [1, 32], strides = [1, 1]} : vector<8x128xf32> to vector<1x32xf32>
    %31 = vector.extract_strided_slice %24 {offsets = [6, 0], sizes = [1, 32], strides = [1, 1]} : vector<8x128xf32> to vector<1x32xf32>
    %32 = vector.extract_strided_slice %24 {offsets = [7, 0], sizes = [1, 32], strides = [1, 1]} : vector<8x128xf32> to vector<1x32xf32>
    %33 = arith.truncf %19 : vector<16x32xf32> to vector<16x32xbf16>
    %34 = arith.truncf %20 : vector<32x96xf32> to vector<32x96xbf16>
    %cst_9 = arith.constant dense<0.000000e+00> : vector<16x96xf32>
    %35 = tpu.matmul %33, %34, %cst_9 {dimension_numbers = #tpu.dot_dimension_numbers<[1], [0], [0], [1], [0, 0, 1, 1], [], []>} : vector<16x32xbf16>, vector<32x96xbf16>, vector<16x96xf32> -> vector<16x96xf32>
    %36 = vector.broadcast %25 : vector<1x96xf32> to vector<16x96xf32>
    %37 = arith.addf %35, %36 : vector<16x96xf32>
    %38 = vector.extract_strided_slice %37 {offsets = [0, 0], sizes = [16, 8], strides = [1, 1]} : vector<16x96xf32> to vector<16x8xf32>
    %39 = vector.extract_strided_slice %37 {offsets = [0, 32], sizes = [16, 8], strides = [1, 1]} : vector<16x96xf32> to vector<16x8xf32>
    %40 = vector.extract_strided_slice %37 {offsets = [0, 64], sizes = [16, 8], strides = [1, 1]} : vector<16x96xf32> to vector<16x8xf32>
    "tpu.trace_start"() <{level = 10 : i32, message = "ne,me->nm"}> : () -> ()
    %cst_10 = arith.constant dense<0.000000e+00> : vector<16x16xf32>
    %41 = tpu.matmul %38, %39, %cst_10 {dimension_numbers = #tpu.dot_dimension_numbers<[1], [1], [0], [0], [0, 0, 1, 0], [], []>} : vector<16x8xf32>, vector<16x8xf32>, vector<16x16xf32> -> vector<16x16xf32>
    "tpu.trace_stop"() : () -> ()
    %cst_11 = arith.constant 0.353553385 : f32
    %42 = vector.broadcast %cst_11 : f32 to vector<16x16xf32>
    %43 = arith.mulf %41, %42 : vector<16x16xf32>
    %44 = arith.addf %43, %2 : vector<16x16xf32>
    %cst_12 = arith.constant dense<0xFF800000> : vector<16xf32>
    %45 = vector.multi_reduction <maximumf>, %44, %cst_12 [1] : vector<16x16xf32> to vector<16xf32>
    %46 = vector.shape_cast %45 : vector<16xf32> to vector<16x1xf32>
    %47 = vector.broadcast %46 : vector<16x1xf32> to vector<16x16xf32>
    %48 = arith.subf %44, %47 : vector<16x16xf32>
    %49 = math.exp %48 : vector<16x16xf32>
    %cst_13 = arith.constant dense<0.000000e+00> : vector<16xf32>
    %50 = vector.multi_reduction <add>, %49, %cst_13 [1] : vector<16x16xf32> to vector<16xf32>
    %51 = vector.shape_cast %50 : vector<16xf32> to vector<16x1xf32>
    %52 = tpu.reciprocal %51 {approx = true} : vector<16x1xf32> -> vector<16x1xf32>
    %53 = vector.broadcast %52 : vector<16x1xf32> to vector<16x16xf32>
    %54 = arith.mulf %49, %53 : vector<16x16xf32>
    %cst_14 = arith.constant dense<0.000000e+00> : vector<16x8xf32>
    %55 = tpu.matmul %54, %40, %cst_14 {dimension_numbers = #tpu.dot_dimension_numbers<[1], [0], [0], [1], [0, 0, 1, 1], [], []>} : vector<16x16xf32>, vector<16x8xf32>, vector<16x8xf32> -> vector<16x8xf32>
    %56 = vector.extract_strided_slice %37 {offsets = [0, 8], sizes = [16, 8], strides = [1, 1]} : vector<16x96xf32> to vector<16x8xf32>
    %57 = vector.extract_strided_slice %37 {offsets = [0, 40], sizes = [16, 8], strides = [1, 1]} : vector<16x96xf32> to vector<16x8xf32>
    %58 = vector.extract_strided_slice %37 {offsets = [0, 72], sizes = [16, 8], strides = [1, 1]} : vector<16x96xf32> to vector<16x8xf32>
    "tpu.trace_start"() <{level = 10 : i32, message = "ne,me->nm"}> : () -> ()
    %cst_15 = arith.constant dense<0.000000e+00> : vector<16x16xf32>
    %59 = tpu.matmul %56, %57, %cst_15 {dimension_numbers = #tpu.dot_dimension_numbers<[1], [1], [0], [0], [0, 0, 1, 0], [], []>} : vector<16x8xf32>, vector<16x8xf32>, vector<16x16xf32> -> vector<16x16xf32>
    "tpu.trace_stop"() : () -> ()
    %cst_16 = arith.constant 0.353553385 : f32
    %60 = vector.broadcast %cst_16 : f32 to vector<16x16xf32>
    %61 = arith.mulf %59, %60 : vector<16x16xf32>
    %62 = arith.addf %61, %2 : vector<16x16xf32>
    %cst_17 = arith.constant dense<0xFF800000> : vector<16xf32>
    %63 = vector.multi_reduction <maximumf>, %62, %cst_17 [1] : vector<16x16xf32> to vector<16xf32>
    %64 = vector.shape_cast %63 : vector<16xf32> to vector<16x1xf32>
    %65 = vector.broadcast %64 : vector<16x1xf32> to vector<16x16xf32>
    %66 = arith.subf %62, %65 : vector<16x16xf32>
    %67 = math.exp %66 : vector<16x16xf32>
    %cst_18 = arith.constant dense<0.000000e+00> : vector<16xf32>
    %68 = vector.multi_reduction <add>, %67, %cst_18 [1] : vector<16x16xf32> to vector<16xf32>
    %69 = vector.shape_cast %68 : vector<16xf32> to vector<16x1xf32>
    %70 = tpu.reciprocal %69 {approx = true} : vector<16x1xf32> -> vector<16x1xf32>
    %71 = vector.broadcast %70 : vector<16x1xf32> to vector<16x16xf32>
    %72 = arith.mulf %67, %71 : vector<16x16xf32>
    %cst_19 = arith.constant dense<0.000000e+00> : vector<16x8xf32>
    %73 = tpu.matmul %72, %58, %cst_19 {dimension_numbers = #tpu.dot_dimension_numbers<[1], [0], [0], [1], [0, 0, 1, 1], [], []>} : vector<16x16xf32>, vector<16x8xf32>, vector<16x8xf32> -> vector<16x8xf32>
    %74 = vector.extract_strided_slice %37 {offsets = [0, 16], sizes = [16, 8], strides = [1, 1]} : vector<16x96xf32> to vector<16x8xf32>
    %75 = vector.extract_strided_slice %37 {offsets = [0, 48], sizes = [16, 8], strides = [1, 1]} : vector<16x96xf32> to vector<16x8xf32>
    %76 = vector.extract_strided_slice %37 {offsets = [0, 80], sizes = [16, 8], strides = [1, 1]} : vector<16x96xf32> to vector<16x8xf32>
    "tpu.trace_start"() <{level = 10 : i32, message = "ne,me->nm"}> : () -> ()
    %cst_20 = arith.constant dense<0.000000e+00> : vector<16x16xf32>
    %77 = tpu.matmul %74, %75, %cst_20 {dimension_numbers = #tpu.dot_dimension_numbers<[1], [1], [0], [0], [0, 0, 1, 0], [], []>} : vector<16x8xf32>, vector<16x8xf32>, vector<16x16xf32> -> vector<16x16xf32>
    "tpu.trace_stop"() : () -> ()
    %cst_21 = arith.constant 0.353553385 : f32
    %78 = vector.broadcast %cst_21 : f32 to vector<16x16xf32>
    %79 = arith.mulf %77, %78 : vector<16x16xf32>
    %80 = arith.addf %79, %2 : vector<16x16xf32>
    %cst_22 = arith.constant dense<0xFF800000> : vector<16xf32>
    %81 = vector.multi_reduction <maximumf>, %80, %cst_22 [1] : vector<16x16xf32> to vector<16xf32>
    %82 = vector.shape_cast %81 : vector<16xf32> to vector<16x1xf32>
    %83 = vector.broadcast %82 : vector<16x1xf32> to vector<16x16xf32>
    %84 = arith.subf %80, %83 : vector<16x16xf32>
    %85 = math.exp %84 : vector<16x16xf32>
    %cst_23 = arith.constant dense<0.000000e+00> : vector<16xf32>
    %86 = vector.multi_reduction <add>, %85, %cst_23 [1] : vector<16x16xf32> to vector<16xf32>
    %87 = vector.shape_cast %86 : vector<16xf32> to vector<16x1xf32>
    %88 = tpu.reciprocal %87 {approx = true} : vector<16x1xf32> -> vector<16x1xf32>
    %89 = vector.broadcast %88 : vector<16x1xf32> to vector<16x16xf32>
    %90 = arith.mulf %85, %89 : vector<16x16xf32>
    %cst_24 = arith.constant dense<0.000000e+00> : vector<16x8xf32>
    %91 = tpu.matmul %90, %76, %cst_24 {dimension_numbers = #tpu.dot_dimension_numbers<[1], [0], [0], [1], [0, 0, 1, 1], [], []>} : vector<16x16xf32>, vector<16x8xf32>, vector<16x8xf32> -> vector<16x8xf32>
    %92 = vector.extract_strided_slice %37 {offsets = [0, 24], sizes = [16, 8], strides = [1, 1]} : vector<16x96xf32> to vector<16x8xf32>
    %93 = vector.extract_strided_slice %37 {offsets = [0, 56], sizes = [16, 8], strides = [1, 1]} : vector<16x96xf32> to vector<16x8xf32>
    %94 = vector.extract_strided_slice %37 {offsets = [0, 88], sizes = [16, 8], strides = [1, 1]} : vector<16x96xf32> to vector<16x8xf32>
    "tpu.trace_start"() <{level = 10 : i32, message = "ne,me->nm"}> : () -> ()
    %cst_25 = arith.constant dense<0.000000e+00> : vector<16x16xf32>
    %95 = tpu.matmul %92, %93, %cst_25 {dimension_numbers = #tpu.dot_dimension_numbers<[1], [1], [0], [0], [0, 0, 1, 0], [], []>} : vector<16x8xf32>, vector<16x8xf32>, vector<16x16xf32> -> vector<16x16xf32>
    "tpu.trace_stop"() : () -> ()
    %cst_26 = arith.constant 0.353553385 : f32
    %96 = vector.broadcast %cst_26 : f32 to vector<16x16xf32>
    %97 = arith.mulf %95, %96 : vector<16x16xf32>
    %98 = arith.addf %97, %2 : vector<16x16xf32>
    %cst_27 = arith.constant dense<0xFF800000> : vector<16xf32>
    %99 = vector.multi_reduction <maximumf>, %98, %cst_27 [1] : vector<16x16xf32> to vector<16xf32>
    %100 = vector.shape_cast %99 : vector<16xf32> to vector<16x1xf32>
    %101 = vector.broadcast %100 : vector<16x1xf32> to vector<16x16xf32>
    %102 = arith.subf %98, %101 : vector<16x16xf32>
    %103 = math.exp %102 : vector<16x16xf32>
    %cst_28 = arith.constant dense<0.000000e+00> : vector<16xf32>
    %104 = vector.multi_reduction <add>, %103, %cst_28 [1] : vector<16x16xf32> to vector<16xf32>
    %105 = vector.shape_cast %104 : vector<16xf32> to vector<16x1xf32>
    %106 = tpu.reciprocal %105 {approx = true} : vector<16x1xf32> -> vector<16x1xf32>
    %107 = vector.broadcast %106 : vector<16x1xf32> to vector<16x16xf32>
    %108 = arith.mulf %103, %107 : vector<16x16xf32>
    %cst_29 = arith.constant dense<0.000000e+00> : vector<16x8xf32>
    %109 = tpu.matmul %108, %94, %cst_29 {dimension_numbers = #tpu.dot_dimension_numbers<[1], [0], [0], [1], [0, 0, 1, 1], [], []>} : vector<16x16xf32>, vector<16x8xf32>, vector<16x8xf32> -> vector<16x8xf32>
    %110 = tpu.concatenate %55, %73, %91, %109 in 1 : vector<16x8xf32>, vector<16x8xf32>, vector<16x8xf32>, vector<16x8xf32> -> vector<16x32xf32>
    %111 = arith.truncf %110 : vector<16x32xf32> to vector<16x32xbf16>
    %112 = arith.truncf %21 : vector<32x32xf32> to vector<32x32xbf16>
    %cst_30 = arith.constant dense<0.000000e+00> : vector<16x32xf32>
    %113 = tpu.matmul %111, %112, %cst_30 {dimension_numbers = #tpu.dot_dimension_numbers<[1], [0], [0], [1], [0, 0, 1, 1], [], []>} : vector<16x32xbf16>, vector<32x32xbf16>, vector<16x32xf32> -> vector<16x32xf32>
    %114 = vector.broadcast %26 : vector<1x32xf32> to vector<16x32xf32>
    %115 = arith.addf %113, %114 : vector<16x32xf32>
    %116 = arith.addf %19, %115 : vector<16x32xf32>
    %cst_31 = arith.constant dense<0.000000e+00> : vector<16xf32>
    %117 = vector.multi_reduction <add>, %116, %cst_31 [1] : vector<16x32xf32> to vector<16xf32>
    %118 = vector.shape_cast %117 : vector<16xf32> to vector<16x1xf32>
    %cst_32 = arith.constant 3.200000e+01 : f32
    %119 = vector.broadcast %cst_32 : f32 to vector<16x1xf32>
    %120 = arith.divf %118, %119 : vector<16x1xf32>
    %121 = vector.broadcast %120 : vector<16x1xf32> to vector<16x32xf32>
    %122 = arith.subf %116, %121 : vector<16x32xf32>
    %123 = arith.mulf %122, %122 : vector<16x32xf32>
    %cst_33 = arith.constant dense<0.000000e+00> : vector<16xf32>
    %124 = vector.multi_reduction <add>, %123, %cst_33 [1] : vector<16x32xf32> to vector<16xf32>
    %125 = vector.shape_cast %124 : vector<16xf32> to vector<16x1xf32>
    %cst_34 = arith.constant 3.200000e+01 : f32
    %126 = vector.broadcast %cst_34 : f32 to vector<16x1xf32>
    %127 = arith.divf %125, %126 : vector<16x1xf32>
    %128 = vector.broadcast %120 : vector<16x1xf32> to vector<16x32xf32>
    %129 = arith.subf %116, %128 : vector<16x32xf32>
    %cst_35 = arith.constant 9.99999974E-6 : f32
    %130 = vector.broadcast %cst_35 : f32 to vector<16x1xf32>
    %131 = arith.addf %127, %130 : vector<16x1xf32>
    %132 = math.rsqrt %131 : vector<16x1xf32>
    %133 = vector.broadcast %132 : vector<16x1xf32> to vector<16x32xf32>
    %134 = arith.mulf %129, %133 : vector<16x32xf32>
    %135 = vector.broadcast %27 : vector<1x32xf32> to vector<16x32xf32>
    %136 = arith.mulf %134, %135 : vector<16x32xf32>
    %137 = vector.broadcast %28 : vector<1x32xf32> to vector<16x32xf32>
    %138 = arith.addf %136, %137 : vector<16x32xf32>
    %139 = arith.truncf %138 : vector<16x32xf32> to vector<16x32xbf16>
    %140 = arith.truncf %22 : vector<32x64xf32> to vector<32x64xbf16>
    %cst_36 = arith.constant dense<0.000000e+00> : vector<16x64xf32>
    %141 = tpu.matmul %139, %140, %cst_36 {dimension_numbers = #tpu.dot_dimension_numbers<[1], [0], [0], [1], [0, 0, 1, 1], [], []>} : vector<16x32xbf16>, vector<32x64xbf16>, vector<16x64xf32> -> vector<16x64xf32>
    %142 = vector.broadcast %29 : vector<1x64xf32> to vector<16x64xf32>
    %143 = arith.addf %141, %142 : vector<16x64xf32>
    %cst_37 = arith.constant 5.000000e-01 : f32
    %144 = vector.broadcast %cst_37 : f32 to vector<16x64xf32>
    %145 = arith.mulf %144, %143 : vector<16x64xf32>
    %cst_38 = arith.constant 0.707106769 : f32
    %146 = vector.broadcast %cst_38 : f32 to vector<16x64xf32>
    %147 = arith.mulf %143, %146 : vector<16x64xf32>
    %148 = math.erf %147 : vector<16x64xf32>
    %cst_39 = arith.constant 1.000000e+00 : f32
    %149 = vector.broadcast %cst_39 : f32 to vector<16x64xf32>
    %150 = arith.addf %149, %148 : vector<16x64xf32>
    %151 = arith.mulf %145, %150 : vector<16x64xf32>
    %152 = arith.truncf %151 : vector<16x64xf32> to vector<16x64xbf16>
    %153 = arith.truncf %23 : vector<64x32xf32> to vector<64x32xbf16>
    %cst_40 = arith.constant dense<0.000000e+00> : vector<16x32xf32>
    %154 = tpu.matmul %152, %153, %cst_40 {dimension_numbers = #tpu.dot_dimension_numbers<[1], [0], [0], [1], [0, 0, 1, 1], [], []>} : vector<16x64xbf16>, vector<64x32xbf16>, vector<16x32xf32> -> vector<16x32xf32>
    %155 = vector.broadcast %30 : vector<1x32xf32> to vector<16x32xf32>
    %156 = arith.addf %154, %155 : vector<16x32xf32>
    %157 = arith.addf %138, %156 : vector<16x32xf32>
    %cst_41 = arith.constant dense<0.000000e+00> : vector<16xf32>
    %158 = vector.multi_reduction <add>, %157, %cst_41 [1] : vector<16x32xf32> to vector<16xf32>
    %159 = vector.shape_cast %158 : vector<16xf32> to vector<16x1xf32>
    %cst_42 = arith.constant 3.200000e+01 : f32
    %160 = vector.broadcast %cst_42 : f32 to vector<16x1xf32>
    %161 = arith.divf %159, %160 : vector<16x1xf32>
    %162 = vector.broadcast %161 : vector<16x1xf32> to vector<16x32xf32>
    %163 = arith.subf %157, %162 : vector<16x32xf32>
    %164 = arith.mulf %163, %163 : vector<16x32xf32>
    %cst_43 = arith.constant dense<0.000000e+00> : vector<16xf32>
    %165 = vector.multi_reduction <add>, %164, %cst_43 [1] : vector<16x32xf32> to vector<16xf32>
    %166 = vector.shape_cast %165 : vector<16xf32> to vector<16x1xf32>
    %cst_44 = arith.constant 3.200000e+01 : f32
    %167 = vector.broadcast %cst_44 : f32 to vector<16x1xf32>
    %168 = arith.divf %166, %167 : vector<16x1xf32>
    %169 = vector.broadcast %161 : vector<16x1xf32> to vector<16x32xf32>
    %170 = arith.subf %157, %169 : vector<16x32xf32>
    %cst_45 = arith.constant 9.99999974E-6 : f32
    %171 = vector.broadcast %cst_45 : f32 to vector<16x1xf32>
    %172 = arith.addf %168, %171 : vector<16x1xf32>
    %173 = math.rsqrt %172 : vector<16x1xf32>
    %174 = vector.broadcast %173 : vector<16x1xf32> to vector<16x32xf32>
    %175 = arith.mulf %170, %174 : vector<16x32xf32>
    %176 = vector.broadcast %31 : vector<1x32xf32> to vector<16x32xf32>
    %177 = arith.mulf %175, %176 : vector<16x32xf32>
    %178 = vector.broadcast %32 : vector<1x32xf32> to vector<16x32xf32>
    %179 = arith.addf %177, %178 : vector<16x32xf32>
    %c168 = arith.constant 168 : index
    %c0_46 = arith.constant 0 : index
    %180 = vector.load %arg2[%c168, %c0_46] : memref<336x128xf32, #tpu.memory_space<vmem>>, vector<32x96xf32>
    %c200 = arith.constant 200 : index
    %c0_47 = arith.constant 0 : index
    %181 = vector.load %arg2[%c200, %c0_47] : memref<336x128xf32, #tpu.memory_space<vmem>>, vector<32x32xf32>
    %c232 = arith.constant 232 : index
    %c0_48 = arith.constant 0 : index
    %182 = vector.load %arg2[%c232, %c0_48] : memref<336x128xf32, #tpu.memory_space<vmem>>, vector<32x64xf32>
    %c264 = arith.constant 264 : index
    %c0_49 = arith.constant 0 : index
    %183 = vector.load %arg2[%c264, %c0_49] : memref<336x128xf32, #tpu.memory_space<vmem>>, vector<64x32xf32>
    %c328 = arith.constant 328 : index
    %c0_50 = arith.constant 0 : index
    %184 = vector.load %arg2[%c328, %c0_50] : memref<336x128xf32, #tpu.memory_space<vmem>>, vector<8x128xf32>
    %185 = vector.extract_strided_slice %184 {offsets = [0, 0], sizes = [1, 96], strides = [1, 1]} : vector<8x128xf32> to vector<1x96xf32>
    %186 = vector.extract_strided_slice %184 {offsets = [1, 0], sizes = [1, 32], strides = [1, 1]} : vector<8x128xf32> to vector<1x32xf32>
    %187 = vector.extract_strided_slice %184 {offsets = [2, 0], sizes = [1, 32], strides = [1, 1]} : vector<8x128xf32> to vector<1x32xf32>
    %188 = vector.extract_strided_slice %184 {offsets = [3, 0], sizes = [1, 32], strides = [1, 1]} : vector<8x128xf32> to vector<1x32xf32>
    %189 = vector.extract_strided_slice %184 {offsets = [4, 0], sizes = [1, 64], strides = [1, 1]} : vector<8x128xf32> to vector<1x64xf32>
    %190 = vector.extract_strided_slice %184 {offsets = [5, 0], sizes = [1, 32], strides = [1, 1]} : vector<8x128xf32> to vector<1x32xf32>
    %191 = vector.extract_strided_slice %184 {offsets = [6, 0], sizes = [1, 32], strides = [1, 1]} : vector<8x128xf32> to vector<1x32xf32>
    %192 = vector.extract_strided_slice %184 {offsets = [7, 0], sizes = [1, 32], strides = [1, 1]} : vector<8x128xf32> to vector<1x32xf32>
    %193 = arith.truncf %179 : vector<16x32xf32> to vector<16x32xbf16>
    %194 = arith.truncf %180 : vector<32x96xf32> to vector<32x96xbf16>
    %cst_51 = arith.constant dense<0.000000e+00> : vector<16x96xf32>
    %195 = tpu.matmul %193, %194, %cst_51 {dimension_numbers = #tpu.dot_dimension_numbers<[1], [0], [0], [1], [0, 0, 1, 1], [], []>} : vector<16x32xbf16>, vector<32x96xbf16>, vector<16x96xf32> -> vector<16x96xf32>
    %196 = vector.broadcast %185 : vector<1x96xf32> to vector<16x96xf32>
    %197 = arith.addf %195, %196 : vector<16x96xf32>
    %198 = vector.extract_strided_slice %197 {offsets = [0, 0], sizes = [16, 8], strides = [1, 1]} : vector<16x96xf32> to vector<16x8xf32>
    %199 = vector.extract_strided_slice %197 {offsets = [0, 32], sizes = [16, 8], strides = [1, 1]} : vector<16x96xf32> to vector<16x8xf32>
    %200 = vector.extract_strided_slice %197 {offsets = [0, 64], sizes = [16, 8], strides = [1, 1]} : vector<16x96xf32> to vector<16x8xf32>
    "tpu.trace_start"() <{level = 10 : i32, message = "ne,me->nm"}> : () -> ()
    %cst_52 = arith.constant dense<0.000000e+00> : vector<16x16xf32>
    %201 = tpu.matmul %198, %199, %cst_52 {dimension_numbers = #tpu.dot_dimension_numbers<[1], [1], [0], [0], [0, 0, 1, 0], [], []>} : vector<16x8xf32>, vector<16x8xf32>, vector<16x16xf32> -> vector<16x16xf32>
    "tpu.trace_stop"() : () -> ()
    %cst_53 = arith.constant 0.353553385 : f32
    %202 = vector.broadcast %cst_53 : f32 to vector<16x16xf32>
    %203 = arith.mulf %201, %202 : vector<16x16xf32>
    %204 = arith.addf %203, %2 : vector<16x16xf32>
    %cst_54 = arith.constant dense<0xFF800000> : vector<16xf32>
    %205 = vector.multi_reduction <maximumf>, %204, %cst_54 [1] : vector<16x16xf32> to vector<16xf32>
    %206 = vector.shape_cast %205 : vector<16xf32> to vector<16x1xf32>
    %207 = vector.broadcast %206 : vector<16x1xf32> to vector<16x16xf32>
    %208 = arith.subf %204, %207 : vector<16x16xf32>
    %209 = math.exp %208 : vector<16x16xf32>
    %cst_55 = arith.constant dense<0.000000e+00> : vector<16xf32>
    %210 = vector.multi_reduction <add>, %209, %cst_55 [1] : vector<16x16xf32> to vector<16xf32>
    %211 = vector.shape_cast %210 : vector<16xf32> to vector<16x1xf32>
    %212 = tpu.reciprocal %211 {approx = true} : vector<16x1xf32> -> vector<16x1xf32>
    %213 = vector.broadcast %212 : vector<16x1xf32> to vector<16x16xf32>
    %214 = arith.mulf %209, %213 : vector<16x16xf32>
    %cst_56 = arith.constant dense<0.000000e+00> : vector<16x8xf32>
    %215 = tpu.matmul %214, %200, %cst_56 {dimension_numbers = #tpu.dot_dimension_numbers<[1], [0], [0], [1], [0, 0, 1, 1], [], []>} : vector<16x16xf32>, vector<16x8xf32>, vector<16x8xf32> -> vector<16x8xf32>
    %216 = vector.extract_strided_slice %197 {offsets = [0, 8], sizes = [16, 8], strides = [1, 1]} : vector<16x96xf32> to vector<16x8xf32>
    %217 = vector.extract_strided_slice %197 {offsets = [0, 40], sizes = [16, 8], strides = [1, 1]} : vector<16x96xf32> to vector<16x8xf32>
    %218 = vector.extract_strided_slice %197 {offsets = [0, 72], sizes = [16, 8], strides = [1, 1]} : vector<16x96xf32> to vector<16x8xf32>
    "tpu.trace_start"() <{level = 10 : i32, message = "ne,me->nm"}> : () -> ()
    %cst_57 = arith.constant dense<0.000000e+00> : vector<16x16xf32>
    %219 = tpu.matmul %216, %217, %cst_57 {dimension_numbers = #tpu.dot_dimension_numbers<[1], [1], [0], [0], [0, 0, 1, 0], [], []>} : vector<16x8xf32>, vector<16x8xf32>, vector<16x16xf32> -> vector<16x16xf32>
    "tpu.trace_stop"() : () -> ()
    %cst_58 = arith.constant 0.353553385 : f32
    %220 = vector.broadcast %cst_58 : f32 to vector<16x16xf32>
    %221 = arith.mulf %219, %220 : vector<16x16xf32>
    %222 = arith.addf %221, %2 : vector<16x16xf32>
    %cst_59 = arith.constant dense<0xFF800000> : vector<16xf32>
    %223 = vector.multi_reduction <maximumf>, %222, %cst_59 [1] : vector<16x16xf32> to vector<16xf32>
    %224 = vector.shape_cast %223 : vector<16xf32> to vector<16x1xf32>
    %225 = vector.broadcast %224 : vector<16x1xf32> to vector<16x16xf32>
    %226 = arith.subf %222, %225 : vector<16x16xf32>
    %227 = math.exp %226 : vector<16x16xf32>
    %cst_60 = arith.constant dense<0.000000e+00> : vector<16xf32>
    %228 = vector.multi_reduction <add>, %227, %cst_60 [1] : vector<16x16xf32> to vector<16xf32>
    %229 = vector.shape_cast %228 : vector<16xf32> to vector<16x1xf32>
    %230 = tpu.reciprocal %229 {approx = true} : vector<16x1xf32> -> vector<16x1xf32>
    %231 = vector.broadcast %230 : vector<16x1xf32> to vector<16x16xf32>
    %232 = arith.mulf %227, %231 : vector<16x16xf32>
    %cst_61 = arith.constant dense<0.000000e+00> : vector<16x8xf32>
    %233 = tpu.matmul %232, %218, %cst_61 {dimension_numbers = #tpu.dot_dimension_numbers<[1], [0], [0], [1], [0, 0, 1, 1], [], []>} : vector<16x16xf32>, vector<16x8xf32>, vector<16x8xf32> -> vector<16x8xf32>
    %234 = vector.extract_strided_slice %197 {offsets = [0, 16], sizes = [16, 8], strides = [1, 1]} : vector<16x96xf32> to vector<16x8xf32>
    %235 = vector.extract_strided_slice %197 {offsets = [0, 48], sizes = [16, 8], strides = [1, 1]} : vector<16x96xf32> to vector<16x8xf32>
    %236 = vector.extract_strided_slice %197 {offsets = [0, 80], sizes = [16, 8], strides = [1, 1]} : vector<16x96xf32> to vector<16x8xf32>
    "tpu.trace_start"() <{level = 10 : i32, message = "ne,me->nm"}> : () -> ()
    %cst_62 = arith.constant dense<0.000000e+00> : vector<16x16xf32>
    %237 = tpu.matmul %234, %235, %cst_62 {dimension_numbers = #tpu.dot_dimension_numbers<[1], [1], [0], [0], [0, 0, 1, 0], [], []>} : vector<16x8xf32>, vector<16x8xf32>, vector<16x16xf32> -> vector<16x16xf32>
    "tpu.trace_stop"() : () -> ()
    %cst_63 = arith.constant 0.353553385 : f32
    %238 = vector.broadcast %cst_63 : f32 to vector<16x16xf32>
    %239 = arith.mulf %237, %238 : vector<16x16xf32>
    %240 = arith.addf %239, %2 : vector<16x16xf32>
    %cst_64 = arith.constant dense<0xFF800000> : vector<16xf32>
    %241 = vector.multi_reduction <maximumf>, %240, %cst_64 [1] : vector<16x16xf32> to vector<16xf32>
    %242 = vector.shape_cast %241 : vector<16xf32> to vector<16x1xf32>
    %243 = vector.broadcast %242 : vector<16x1xf32> to vector<16x16xf32>
    %244 = arith.subf %240, %243 : vector<16x16xf32>
    %245 = math.exp %244 : vector<16x16xf32>
    %cst_65 = arith.constant dense<0.000000e+00> : vector<16xf32>
    %246 = vector.multi_reduction <add>, %245, %cst_65 [1] : vector<16x16xf32> to vector<16xf32>
    %247 = vector.shape_cast %246 : vector<16xf32> to vector<16x1xf32>
    %248 = tpu.reciprocal %247 {approx = true} : vector<16x1xf32> -> vector<16x1xf32>
    %249 = vector.broadcast %248 : vector<16x1xf32> to vector<16x16xf32>
    %250 = arith.mulf %245, %249 : vector<16x16xf32>
    %cst_66 = arith.constant dense<0.000000e+00> : vector<16x8xf32>
    %251 = tpu.matmul %250, %236, %cst_66 {dimension_numbers = #tpu.dot_dimension_numbers<[1], [0], [0], [1], [0, 0, 1, 1], [], []>} : vector<16x16xf32>, vector<16x8xf32>, vector<16x8xf32> -> vector<16x8xf32>
    %252 = vector.extract_strided_slice %197 {offsets = [0, 24], sizes = [16, 8], strides = [1, 1]} : vector<16x96xf32> to vector<16x8xf32>
    %253 = vector.extract_strided_slice %197 {offsets = [0, 56], sizes = [16, 8], strides = [1, 1]} : vector<16x96xf32> to vector<16x8xf32>
    %254 = vector.extract_strided_slice %197 {offsets = [0, 88], sizes = [16, 8], strides = [1, 1]} : vector<16x96xf32> to vector<16x8xf32>
    "tpu.trace_start"() <{level = 10 : i32, message = "ne,me->nm"}> : () -> ()
    %cst_67 = arith.constant dense<0.000000e+00> : vector<16x16xf32>
    %255 = tpu.matmul %252, %253, %cst_67 {dimension_numbers = #tpu.dot_dimension_numbers<[1], [1], [0], [0], [0, 0, 1, 0], [], []>} : vector<16x8xf32>, vector<16x8xf32>, vector<16x16xf32> -> vector<16x16xf32>
    "tpu.trace_stop"() : () -> ()
    %cst_68 = arith.constant 0.353553385 : f32
    %256 = vector.broadcast %cst_68 : f32 to vector<16x16xf32>
    %257 = arith.mulf %255, %256 : vector<16x16xf32>
    %258 = arith.addf %257, %2 : vector<16x16xf32>
    %cst_69 = arith.constant dense<0xFF800000> : vector<16xf32>
    %259 = vector.multi_reduction <maximumf>, %258, %cst_69 [1] : vector<16x16xf32> to vector<16xf32>
    %260 = vector.shape_cast %259 : vector<16xf32> to vector<16x1xf32>
    %261 = vector.broadcast %260 : vector<16x1xf32> to vector<16x16xf32>
    %262 = arith.subf %258, %261 : vector<16x16xf32>
    %263 = math.exp %262 : vector<16x16xf32>
    %cst_70 = arith.constant dense<0.000000e+00> : vector<16xf32>
    %264 = vector.multi_reduction <add>, %263, %cst_70 [1] : vector<16x16xf32> to vector<16xf32>
    %265 = vector.shape_cast %264 : vector<16xf32> to vector<16x1xf32>
    %266 = tpu.reciprocal %265 {approx = true} : vector<16x1xf32> -> vector<16x1xf32>
    %267 = vector.broadcast %266 : vector<16x1xf32> to vector<16x16xf32>
    %268 = arith.mulf %263, %267 : vector<16x16xf32>
    %cst_71 = arith.constant dense<0.000000e+00> : vector<16x8xf32>
    %269 = tpu.matmul %268, %254, %cst_71 {dimension_numbers = #tpu.dot_dimension_numbers<[1], [0], [0], [1], [0, 0, 1, 1], [], []>} : vector<16x16xf32>, vector<16x8xf32>, vector<16x8xf32> -> vector<16x8xf32>
    %270 = tpu.concatenate %215, %233, %251, %269 in 1 : vector<16x8xf32>, vector<16x8xf32>, vector<16x8xf32>, vector<16x8xf32> -> vector<16x32xf32>
    %271 = arith.truncf %270 : vector<16x32xf32> to vector<16x32xbf16>
    %272 = arith.truncf %181 : vector<32x32xf32> to vector<32x32xbf16>
    %cst_72 = arith.constant dense<0.000000e+00> : vector<16x32xf32>
    %273 = tpu.matmul %271, %272, %cst_72 {dimension_numbers = #tpu.dot_dimension_numbers<[1], [0], [0], [1], [0, 0, 1, 1], [], []>} : vector<16x32xbf16>, vector<32x32xbf16>, vector<16x32xf32> -> vector<16x32xf32>
    %274 = vector.broadcast %186 : vector<1x32xf32> to vector<16x32xf32>
    %275 = arith.addf %273, %274 : vector<16x32xf32>
    %276 = arith.addf %179, %275 : vector<16x32xf32>
    %cst_73 = arith.constant dense<0.000000e+00> : vector<16xf32>
    %277 = vector.multi_reduction <add>, %276, %cst_73 [1] : vector<16x32xf32> to vector<16xf32>
    %278 = vector.shape_cast %277 : vector<16xf32> to vector<16x1xf32>
    %cst_74 = arith.constant 3.200000e+01 : f32
    %279 = vector.broadcast %cst_74 : f32 to vector<16x1xf32>
    %280 = arith.divf %278, %279 : vector<16x1xf32>
    %281 = vector.broadcast %280 : vector<16x1xf32> to vector<16x32xf32>
    %282 = arith.subf %276, %281 : vector<16x32xf32>
    %283 = arith.mulf %282, %282 : vector<16x32xf32>
    %cst_75 = arith.constant dense<0.000000e+00> : vector<16xf32>
    %284 = vector.multi_reduction <add>, %283, %cst_75 [1] : vector<16x32xf32> to vector<16xf32>
    %285 = vector.shape_cast %284 : vector<16xf32> to vector<16x1xf32>
    %cst_76 = arith.constant 3.200000e+01 : f32
    %286 = vector.broadcast %cst_76 : f32 to vector<16x1xf32>
    %287 = arith.divf %285, %286 : vector<16x1xf32>
    %288 = vector.broadcast %280 : vector<16x1xf32> to vector<16x32xf32>
    %289 = arith.subf %276, %288 : vector<16x32xf32>
    %cst_77 = arith.constant 9.99999974E-6 : f32
    %290 = vector.broadcast %cst_77 : f32 to vector<16x1xf32>
    %291 = arith.addf %287, %290 : vector<16x1xf32>
    %292 = math.rsqrt %291 : vector<16x1xf32>
    %293 = vector.broadcast %292 : vector<16x1xf32> to vector<16x32xf32>
    %294 = arith.mulf %289, %293 : vector<16x32xf32>
    %295 = vector.broadcast %187 : vector<1x32xf32> to vector<16x32xf32>
    %296 = arith.mulf %294, %295 : vector<16x32xf32>
    %297 = vector.broadcast %188 : vector<1x32xf32> to vector<16x32xf32>
    %298 = arith.addf %296, %297 : vector<16x32xf32>
    %299 = arith.truncf %298 : vector<16x32xf32> to vector<16x32xbf16>
    %300 = arith.truncf %182 : vector<32x64xf32> to vector<32x64xbf16>
    %cst_78 = arith.constant dense<0.000000e+00> : vector<16x64xf32>
    %301 = tpu.matmul %299, %300, %cst_78 {dimension_numbers = #tpu.dot_dimension_numbers<[1], [0], [0], [1], [0, 0, 1, 1], [], []>} : vector<16x32xbf16>, vector<32x64xbf16>, vector<16x64xf32> -> vector<16x64xf32>
    %302 = vector.broadcast %189 : vector<1x64xf32> to vector<16x64xf32>
    %303 = arith.addf %301, %302 : vector<16x64xf32>
    %cst_79 = arith.constant 5.000000e-01 : f32
    %304 = vector.broadcast %cst_79 : f32 to vector<16x64xf32>
    %305 = arith.mulf %304, %303 : vector<16x64xf32>
    %cst_80 = arith.constant 0.707106769 : f32
    %306 = vector.broadcast %cst_80 : f32 to vector<16x64xf32>
    %307 = arith.mulf %303, %306 : vector<16x64xf32>
    %308 = math.erf %307 : vector<16x64xf32>
    %cst_81 = arith.constant 1.000000e+00 : f32
    %309 = vector.broadcast %cst_81 : f32 to vector<16x64xf32>
    %310 = arith.addf %309, %308 : vector<16x64xf32>
    %311 = arith.mulf %305, %310 : vector<16x64xf32>
    %312 = arith.truncf %311 : vector<16x64xf32> to vector<16x64xbf16>
    %313 = arith.truncf %183 : vector<64x32xf32> to vector<64x32xbf16>
    %cst_82 = arith.constant dense<0.000000e+00> : vector<16x32xf32>
    %314 = tpu.matmul %312, %313, %cst_82 {dimension_numbers = #tpu.dot_dimension_numbers<[1], [0], [0], [1], [0, 0, 1, 1], [], []>} : vector<16x64xbf16>, vector<64x32xbf16>, vector<16x32xf32> -> vector<16x32xf32>
    %315 = vector.broadcast %190 : vector<1x32xf32> to vector<16x32xf32>
    %316 = arith.addf %314, %315 : vector<16x32xf32>
    %317 = arith.addf %298, %316 : vector<16x32xf32>
    %cst_83 = arith.constant dense<0.000000e+00> : vector<16xf32>
    %318 = vector.multi_reduction <add>, %317, %cst_83 [1] : vector<16x32xf32> to vector<16xf32>
    %319 = vector.shape_cast %318 : vector<16xf32> to vector<16x1xf32>
    %cst_84 = arith.constant 3.200000e+01 : f32
    %320 = vector.broadcast %cst_84 : f32 to vector<16x1xf32>
    %321 = arith.divf %319, %320 : vector<16x1xf32>
    %322 = vector.broadcast %321 : vector<16x1xf32> to vector<16x32xf32>
    %323 = arith.subf %317, %322 : vector<16x32xf32>
    %324 = arith.mulf %323, %323 : vector<16x32xf32>
    %cst_85 = arith.constant dense<0.000000e+00> : vector<16xf32>
    %325 = vector.multi_reduction <add>, %324, %cst_85 [1] : vector<16x32xf32> to vector<16xf32>
    %326 = vector.shape_cast %325 : vector<16xf32> to vector<16x1xf32>
    %cst_86 = arith.constant 3.200000e+01 : f32
    %327 = vector.broadcast %cst_86 : f32 to vector<16x1xf32>
    %328 = arith.divf %326, %327 : vector<16x1xf32>
    %329 = vector.broadcast %321 : vector<16x1xf32> to vector<16x32xf32>
    %330 = arith.subf %317, %329 : vector<16x32xf32>
    %cst_87 = arith.constant 9.99999974E-6 : f32
    %331 = vector.broadcast %cst_87 : f32 to vector<16x1xf32>
    %332 = arith.addf %328, %331 : vector<16x1xf32>
    %333 = math.rsqrt %332 : vector<16x1xf32>
    %334 = vector.broadcast %333 : vector<16x1xf32> to vector<16x32xf32>
    %335 = arith.mulf %330, %334 : vector<16x32xf32>
    %336 = vector.broadcast %191 : vector<1x32xf32> to vector<16x32xf32>
    %337 = arith.mulf %335, %336 : vector<16x32xf32>
    %338 = vector.broadcast %192 : vector<1x32xf32> to vector<16x32xf32>
    %339 = arith.addf %337, %338 : vector<16x32xf32>
    %c0_88 = arith.constant 0 : index
    %c0_89 = arith.constant 0 : index
    %340 = vector.load %arg3[%c0_88, %c0_89] : memref<16x32xf32, #tpu.memory_space<vmem>>, vector<16x32xf32>
    tpu.vector_store %arg3[%c0_88, %c0_89], %339 {strides = array<i32>} : memref<16x32xf32, #tpu.memory_space<vmem>>, vector<16x32xf32>,
    return
  }
}

</mosaic_0001>

<bundles_post_ra>
// kernel: int_transformer_forward.1
= control target key start
LH: loop header
LB: loop body
LE: loop exit
PB: predicated region body
PF: predicated region fallthrough
CT: control target
= control target key end

     0   :  { %v3243_v3 = vmov 48   ;;  %v3244_v8 = vmov 0.0   ;;  %s3875_s0 = inlined_call_operand.vmem [shape: f32[16,50], index: 0, kind: input, shape index: {}]   ;;  %s3876_s1 = inlined_call_operand.vmem [shape: f32[128,32], index: 1, kind: input, shape index: {}]   ;;  %s3877_s2 = inlined_call_operand.vmem [shape: f32[336,128], index: 2, kind: input, shape index: {}]   ;;  %s3878_s3 = inlined_call_operand.hbm [shape: f32[16,32], index: 3, kind: output, shape index: {}]  }
   0x1   :  { %v3286_v0 = vld [vmem:[%s3875_s0 + $0x8] sm:$0xff]  ;;  %v48_v1 = vld [vmem:[%s3876_s1] sm:$0xff]  ;;  %3018 = vset.pattern.permute.xlu0 %v3243_v3  ;;  %v50_v6 = vld [vmem:[%s3876_s1 + $0x10] sm:$0xff]  ;;  %2698 = vmatprep.subr.bf16.mxu1 %v3244_v8 }
   0x2   :  { %v49_v2 = vld [vmem:[%s3876_s1 + $0x8] sm:$0xff]  ;;  %v2994_v4 = vtrunc.f32 %v3286_v0  ;;  %v51_v7 = vld [vmem:[%s3876_s1 + $0x18] sm:$0xff]  ;;  %v52_v10 = vld [vmem:[%s3876_s1 + $0x20] sm:$0xff]  ;;  %3055 = vset.pattern.permute.xlu1 %v3243_v3 }
   0x3   :  { %v2882_v5 = vpack.c.bf16 %v49_v2, %v48_v1  ;;  %v2886_v9 = vpack.c.bf16 %v51_v7, %v50_v6  ;;  %v53_v11 = vld [vmem:[%s3876_s1 + $0x28] sm:$0xff] }
   0x4   :  { %v2995_v12 = vcvt.f32.s32 %v2994_v4  ;;  %v2890_v13 = vpack.c.bf16 %v53_v11, %v52_v10 }
   0x5   :  { %2883 = vmatprep.subr.bf16.mxu0 %v2882_v5 }
   0x6   :  { %2885 = vmatpush3.bf16.msra.mxu0 %v2882_v5  ;;  %26 = vperm.xlu0 %3018, %v2995_v12  }
   0x7   :  { %2887 = vmatprep.subr.bf16.mxu0 %v2886_v9 }
   0x8   :  { %8 = vsyncpa [#allocation3], 0  ;;  %v54_v14 = vld [vmem:[%s3876_s1 + $0x30] sm:$0xff]  ;;  %v55_v15 = vld [vmem:[%s3876_s1 + $0x38] sm:$0xff]  ;;  %v3245_v16 = vmov 49   ;;  %v20_v33 = vlaneseq  ;;  %vm3246_vm2 = vmmov 0  }
   0x9   :  { %v2894_v17 = vpack.c.bf16 %v55_v15, %v54_v14  ;;  %v56_v18 = vld [vmem:[%s3876_s1 + $0x40] sm:$0xff]  ;;  %v57_v19 = vld [vmem:[%s3876_s1 + $0x48] sm:$0xff]  ;;  %v58_v21 = vld [vmem:[%s3876_s1 + $0x50] sm:$0xff]  ;;  %2702 = vmatprep.mubr.msk.bf16.mxu1 %vm3246_vm2, %v3244_v8  ;;  %vm167_vm3 = vcmask 261120   ;;  %vm218_vm4 = vcmask 64512   ;;  %s3247_s29 = smov 96  }
   0xa   :  { %2889 = vmatpush3.bf16.msra.mxu0 %v2886_v9  ;;  %3019 = vset.pattern.permute.xlu0 %v3245_v16  ;;  %v2898_v20 = vpack.c.bf16 %v57_v19, %v56_v18  ;;  %v59_v22 = vld [vmem:[%s3876_s1 + $0x58] sm:$0xff]  ;;  %v139_v23 = vld [vmem:[%s3877_s2] sm:$0xff]  ;;  %v140_v24 = vld [vmem:[%s3877_s2 + $0x8] sm:$0xff]  ;;  %v3345_v34 = vand.u32 127, %v20_v33  ;;  %v3373_v49 = vshrl.u32 %v20_v33, 7  ;;  %vm314_vm6 = vcmask 130048  }
   0xb   :  { %2891 = vmatprep.subr.bf16.mxu0 %v2890_v13  ;;  %38 = vperm.xlu0 %3019, %v2995_v12   ;;  %v161_v25 = vpack.c.bf16 %v140_v24, %v139_v23  ;;  %v2902_v26 = vpack.c.bf16 %v59_v22, %v58_v21  ;;  %v60_v27 = vld [vmem:[%s3876_s1 + $0x60] sm:$0xff]  ;;  %v61_v28 = vld [vmem:[%s3876_s1 + $0x68] sm:$0xff]  ;;  %v62_v30 = vld [vmem:[%s3876_s1 + $0x70] sm:$0xff]  ;;  %s3248_s30 = smov 64   ;;  %s3249_s4 = smov 120   ;;  %vm1064_vm9 = vcmask 195584  }
   0xc   :  { %v2906_v29 = vpack.c.bf16 %v61_v28, %v60_v27  ;;  %v63_v31 = vld [vmem:[%s3876_s1 + $0x78] sm:$0xff]  ;;  %v141_v40 = vld [vmem:[%s3877_s2 + $0x10] sm:$0xff]  ;;  %v3362_v43 = vld [vmem:[%s3875_s0] sm:$0xff]  ;;  %v165_v50 = vsub.s32 0, %v3373_v49  ;;  %s3250_s5 = smov 88   ;;  %s3251_s6 = smov 56  }
   0xd   :  { %2699 = vmatpush3.bf16.msra.mxu1 %v161_v25  ;;  %v2910_v32 = vpack.c.bf16 %v63_v31, %v62_v30  ;;  %v142_v41 = vld [vmem:[%s3877_s2 + $0x18] sm:$0xff]  ;;  %v3379_v51 = vld [vmem:[%s3877_s2 + $0xa0] sm:$0xff]  ;;  %vm3402_vm5 = vmpackc.low %vm218_vm4, %vm218_vm4  ;;  %s3252_s7 = smov 112   ;;  %s3253_s8 = smov 80   ;;  %vm1229_vm10 = vcmask 523264  }
   0xe   :  { %2893 = vmatpush3.bf16.msra.mxu0 %v2890_v13  ;;  %2700 = vmatprep.subr.bf16.mxu1 %v3244_v8  ;;  %v162_v42 = vpack.c.bf16 %v142_v41, %v141_v40  ;;  %v166_v52 = vrot.slane %v3379_v51, %v165_v50  ;;  %s3254_s9 = smov 48   ;;  %s3255_s10 = smov 104  }
   0xf   :  { %2895 = vmatprep.subr.bf16.mxu0 %v2894_v17  ;;  %s3256_s11 = smov 72   ;;  %s3257_s12 = smov 40  }
  0x10   :  { %s3258_s13 = smov 8   ;;  %s3259_s14 = smov 16  }
  0x11   :  { %2701 = vmatpush3.bf16.msra.mxu1 %v162_v42  ;;  %s3260_s1 = smov 24  }
  0x12   :  { %2897 = vmatpush3.bf16.msra.mxu0 %v2894_v17 }
  0x13   :  { %2899 = vmatprep.subr.bf16.mxu0 %v2898_v20 }
  0x16   :  { %2901 = vmatpush3.bf16.msra.mxu0 %v2898_v20 }
  0x17   :  { %2903 = vmatprep.subr.bf16.mxu0 %v2902_v26 }
  0x1a   :  { %2905 = vmatpush3.bf16.msra.mxu0 %v2902_v26 }
  0x1b   :  { %2907 = vmatprep.subr.bf16.mxu0 %v2906_v29 }
  0x1e   :  { %2909 = vmatpush3.bf16.msra.mxu0 %v2906_v29 }
  0x1f   :  { %2911 = vmatprep.subr.bf16.mxu0 %v2910_v32 }
  0x22   :  { %2913 = vmatpush3.bf16.msra.mxu0 %v2910_v32 }
  0x85   :  { %v27_v35 = vpop.permute.xlu0 %26 }
  0x86   :  { %vm29_vm0 = vcmp.eq.s32.totalorder %v3345_v34, %v27_v35 }
  0x87   :  { %v2494_v37 = vsel %vm29_vm0, 1.0, %v3244_v8 }
  0x8a   :  { %v39_v36 = vpop.permute.xlu0 %38 }
  0x8b   :  { %vm41_vm1 = vcmp.eq.s32.totalorder %v3345_v34, %v39_v36 }
  0x8c   :  { %v2496_v38 = vsel %vm41_vm1, 1.0, %v3244_v8 }
  0x8d   :  { %v47_v39 = vadd.f32 %v2496_v38, %v2494_v37 }
  0x8f   :  { %2696 = vmatmul.mubr.f32.vlgmr.msra.gmra.mrb[0].mxu0 %v47_v39 }
 0x162   :  { %v2697_v44 = vpop.f32.mrb[0].mxu0 }
 0x163   :  { %v3365_v45 = vadd.f32 %v2697_v44, %v3286_v0  ;;  %v130_v46 = vpop.f32.mrb[1].mxu0 }
 0x164   :  { %v3368_v47 = vadd.f32 %v130_v46, %v3362_v43 }
 0x166   :  { %v160_v48 = vpack.c.bf16 %v3365_v45, %v3368_v47 }
 0x168   :  { %2703 = vmatmul.mubr.msk.bf16.vlgmr.msra.gmra.mrb[0].mxu1 %vm167_vm3, %v160_v48 }
 0x23b   :  { %v205_v53 = vpop.f32.mrb[0].mxu1 }
 0x23c   :  { %v3384_v54 = vadd.f32 %v205_v53, %v166_v52  ;;  %v2704_v55 = vpop.f32.mrb[1].mxu1 }
 0x23d   :  { %v208_v56 = vpop.f32.mrb[2].mxu1 }
 0x23e   :  { %v3386_v57 = vadd.f32 %v208_v56, %v166_v52  ;;  %v2705_v58 = vpop.f32.mrb[3].mxu1  ;;  %2710 = vmatprep.mubr.msk.f32.mxu1 %vm218_vm4, %v3384_v54 }
 0x240   :  { %v3392_v59 = vpack.i.bf16 %v3386_v57, %v3384_v54 }
 0x242   :  { %3021 = vrot.lane.b32.xlu1 %v3392_v59, %s3247_s29 }
 0x246   :  { %306 = vrot.lane.b32.xlu1 %v3362_v43, %s3247_s29 }
 0x24a   :  { %308 = vrot.lane.b32.xlu1 %v3286_v0, %s3247_s29 }
 0x2b4   :  { %v3022_v60 = vpop.permute.xlu1 %3021 }
 0x2b5   :  { %v3024_v61 = vunpack.i.h.bf16 %v3022_v60  ;;  %v3023_v62 = vunpack.i.l.bf16 %v3022_v60 }
 0x2b7   :  { %v2914_v1 = vpack.c.bf16 %v3024_v61, %v3023_v62 }
 0x2b8   :  { %v3412_v0 = vpop.permute.xlu1 %306 }
 0x2b9   :  { %2916 = vmatprep.subr.msk.bf16.mxu1 %vm3402_vm5, %v2914_v1 }
 0x2ba   :  { %2919 = vmatpush3.bf16.xpose.msk.msra.mxu1 %vm3402_vm5, %v2914_v1 }
 0x2bc   :  { %v3414_v3 = vpop.permute.xlu1 %308 }
 0x2c1   :  { %2711 = vmatmul.mubr.msk.f32.vlgmr.msra.gmra.mrb[4].mxu1 %vm218_vm4, %v3386_v57 }
 0x394   :  { %v2712_v2 = vpop.f32.mrb[4].mxu1 }
 0x395   :  { %v303_v4 = vmul.f32 0.35355338, %v2712_v2  ;;  %v293_v5 = vpop.f32.mrb[5].mxu1 }
 0x396   :  { %v302_v6 = vmul.f32 0.35355338, %v293_v5 }
 0x397   :  { %v313_v7 = vadd.f32 %v3414_v3, %v303_v4 }
 0x398   :  { %v312_v9 = vadd.f32 %v3412_v0, %v302_v6 }
 0x399   :  { %v318_v10 = vsel %vm314_vm6, %v313_v7, -inf }
 0x39a   :  { %319 = vmax.xlane.f32.xlu1 %v318_v10  ;;  %v315_v11 = vsel %vm314_vm6, %v312_v9, -inf }
 0x39b   :  { %316 = vmax.xlane.f32.xlu0 %v315_v11 }
 0x3ab   :  { %3026 = vrot.lane.b32.xlu1 %v3392_v59, %s3248_s30 }
 0x3af   :  { %424 = vrot.lane.b32.xlu1 %v3384_v54, %s3249_s4 }
 0x3b3   :  { %426 = vrot.lane.b32.xlu1 %v3386_v57, %s3249_s4 }
 0x427   :  { %v320_v12 = vpop.xlane.xlu1 %319 }
 0x428   :  { %v322_v13 = vsub.f32 %v313_v7, %v320_v12  ;;  %v317_v14 = vpop.xlane.xlu0 %316 }
 0x429   :  { %v321_v15 = vsub.f32 %v312_v9, %v317_v14 }
 0x42a   :  { %v325_v16 = vmul.f32 1.442695, %v322_v13 }
 0x42b   :  { %v323_v17 = vmul.f32 1.442695, %v321_v15  ;;  %v3027_v18 = vpop.permute.xlu1 %3026 }
 0x42c   :  { %3131 = vpow2.f32 %v325_v16  ;;  %v3029_v19 = vunpack.i.h.bf16 %v3027_v18  ;;  %v3028_v20 = vunpack.i.l.bf16 %v3027_v18 }
 0x42d   :  { %3133 = vpow2.f32 %v323_v17 }
 0x42e   :  { %v2920_v21 = vpack.c.bf16 %v3029_v19, %v3028_v20 }
 0x42f   :  { %v425_v37 = vpop.permute.xlu1 %424 }
 0x430   :  { %2921 = vmatprep.subr.bf16.mxu1 %v2920_v21 }
 0x431   :  { %2923 = vmatpush3.bf16.msra.mxu1 %v2920_v21 }
 0x433   :  { %v427_v38 = vpop.permute.xlu1 %426 }
 0x436   :  { %v3132_v22 = vpop.eup %3131 }
 0x437   :  { %v330_v23 = vsel %vm314_vm6, %v3132_v22, 0.0  ;;  %v3134_v24 = vpop.eup %3133 }
 0x438   :  { %331 = vadd.xlane.f32.xlu0 %v330_v23  ;;  %v327_v25 = vsel %vm314_vm6, %v3134_v24, 0.0 }
 0x43c   :  { %328 = vadd.xlane.f32.xlu0 %v327_v25 }
 0x452   :  { %3031 = vrot.lane.b32.xlu0 %v3392_v59, %s3250_s5 }
 0x4c5   :  { %v332_v26 = vpop.xlane.xlu0 %331 }
 0x4c6   :  { %3135 = vrcp.f32 %v332_v26 }
 0x4c9   :  { %v329_v27 = vpop.xlane.xlu0 %328 }
 0x4ca   :  { %3137 = vrcp.f32 %v329_v27 }
 0x4cd   :  { %v3032_v28 = vpop.permute.xlu0 %3031 }
 0x4ce   :  { %v3034_v29 = vunpack.i.h.bf16 %v3032_v28  ;;  %v3033_v30 = vunpack.i.l.bf16 %v3032_v28 }
 0x4d0   :  { %v2924_v31 = vpack.c.bf16 %v3034_v29, %v3033_v30  ;;  %v3136_v32 = vpop.eup %3135 }
 0x4d1   :  { %v336_v36 = vmul.f32 %v3136_v32, %v3132_v22 }
 0x4d2   :  { %2926 = vmatprep.subr.msk.bf16.mxu1 %vm3402_vm5, %v2924_v31 }
 0x4d4   :  { %v3138_v33 = vpop.eup %3137 }
 0x4d5   :  { %v335_v35 = vmul.f32 %v3138_v33, %v3134_v24 }
 0x4d7   :  { %2717 = vmatprep.mubr.msk.f32.mxu1 %vm314_vm6, %v335_v35 }
 0x4d8   :  { %2718 = vmatmul.mubr.msk.f32.vlgmr.msra.gmra.mrb[6].mxu1 %vm314_vm6, %v336_v36 }
 0x4d9   :  { %2929 = vmatpush3.bf16.xpose.msk.msra.mxu1 %vm3402_vm5, %v2924_v31  ;;  %2724 = vmatprep.mubr.msk.f32.mxu1 %vm218_vm4, %v425_v37 }
 0x4e0   :  { %2725 = vmatmul.mubr.msk.f32.vlgmr.msra.gmra.mrb[8].mxu1 %vm218_vm4, %v427_v38 }
 0x5ab   :  { %v3438_v39 = vpop.f32.mrb[6].mxu1 }
 0x5ac   :  { %v3440_v40 = vpop.f32.mrb[7].mxu1 }
 0x5b3   :  { %v2726_v41 = vpop.f32.mrb[8].mxu1 }
 0x5b4   :  { %v516_v42 = vmul.f32 0.35355338, %v2726_v41  ;;  %v506_v44 = vpop.f32.mrb[9].mxu1 }
 0x5b5   :  { %v515_v46 = vmul.f32 0.35355338, %v506_v44 }
 0x5b6   :  { %v518_v48 = vadd.f32 %v516_v42, %v3414_v3 }
 0x5b7   :  { %v517_v52 = vadd.f32 %v515_v46, %v3412_v0 }
 0x5b8   :  { %v522_v53 = vsel %vm314_vm6, %v518_v48, -inf }
 0x5b9   :  { %523 = vmax.xlane.f32.xlu1 %v522_v53  ;;  %v519_v55 = vsel %vm314_vm6, %v517_v52, -inf }
 0x5ba   :  { %520 = vmax.xlane.f32.xlu0 %v519_v55 }
 0x5ca   :  { %3036 = vrot.lane.b32.xlu1 %v3392_v59, %s3251_s6 }
 0x5ce   :  { %628 = vrot.lane.b32.xlu1 %v3384_v54, %s3252_s7 }
 0x5d2   :  { %630 = vrot.lane.b32.xlu1 %v3386_v57, %s3252_s7 }
 0x646   :  { %v524_v56 = vpop.xlane.xlu1 %523 }
 0x647   :  { %v526_v58 = vsub.f32 %v518_v48, %v524_v56  ;;  %v521_v60 = vpop.xlane.xlu0 %520 }
 0x648   :  { %v525_v61 = vsub.f32 %v517_v52, %v521_v60 }
 0x649   :  { %v529_v62 = vmul.f32 1.442695, %v526_v58 }
 0x64a   :  { %v527_v1 = vmul.f32 1.442695, %v525_v61  ;;  %v3037_v2 = vpop.permute.xlu1 %3036 }
 0x64b   :  { %3139 = vpow2.f32 %v529_v62  ;;  %v3039_v4 = vunpack.i.h.bf16 %v3037_v2  ;;  %v3038_v5 = vunpack.i.l.bf16 %v3037_v2 }
 0x64c   :  { %3141 = vpow2.f32 %v527_v1 }
 0x64d   :  { %v2930_v6 = vpack.c.bf16 %v3039_v4, %v3038_v5 }
 0x64e   :  { %v629_v22 = vpop.permute.xlu1 %628 }
 0x64f   :  { %2931 = vmatprep.subr.bf16.mxu1 %v2930_v6 }
 0x650   :  { %2933 = vmatpush3.bf16.msra.mxu1 %v2930_v6 }
 0x652   :  { %v631_v23 = vpop.permute.xlu1 %630 }
 0x655   :  { %v3140_v7 = vpop.eup %3139 }
 0x656   :  { %v534_v9 = vsel %vm314_vm6, %v3140_v7, 0.0  ;;  %v3142_v10 = vpop.eup %3141 }
 0x657   :  { %535 = vadd.xlane.f32.xlu0 %v534_v9  ;;  %v531_v11 = vsel %vm314_vm6, %v3142_v10, 0.0 }
 0x65b   :  { %532 = vadd.xlane.f32.xlu0 %v531_v11 }
 0x671   :  { %3041 = vrot.lane.b32.xlu0 %v3392_v59, %s3253_s8 }
 0x6e4   :  { %v536_v12 = vpop.xlane.xlu0 %535 }
 0x6e5   :  { %3143 = vrcp.f32 %v536_v12 }
 0x6e8   :  { %v533_v13 = vpop.xlane.xlu0 %532 }
 0x6e9   :  { %3145 = vrcp.f32 %v533_v13 }
 0x6ec   :  { %v3042_v14 = vpop.permute.xlu0 %3041 }
 0x6ed   :  { %v3044_v15 = vunpack.i.h.bf16 %v3042_v14  ;;  %v3043_v16 = vunpack.i.l.bf16 %v3042_v14 }
 0x6ef   :  { %v2934_v17 = vpack.c.bf16 %v3044_v15, %v3043_v16  ;;  %v3144_v18 = vpop.eup %3143 }
 0x6f0   :  { %v540_v21 = vmul.f32 %v3144_v18, %v3140_v7 }
 0x6f1   :  { %2936 = vmatprep.subr.msk.bf16.mxu1 %vm3402_vm5, %v2934_v17 }
 0x6f3   :  { %v3146_v19 = vpop.eup %3145 }
 0x6f4   :  { %v539_v20 = vmul.f32 %v3146_v19, %v3142_v10 }
 0x6f6   :  { %2731 = vmatprep.mubr.msk.f32.mxu1 %vm314_vm6, %v539_v20 }
 0x6f7   :  { %2732 = vmatmul.mubr.msk.f32.vlgmr.msra.gmra.mrb[10].mxu1 %vm314_vm6, %v540_v21 }
 0x6f8   :  { %2939 = vmatpush3.bf16.xpose.msk.msra.mxu1 %vm3402_vm5, %v2934_v17  ;;  %2738 = vmatprep.mubr.msk.f32.mxu1 %vm218_vm4, %v629_v22  ;;  %v2996_v22 = vtrunc.f32 %v3362_v43 }
 0x6ff   :  { %2739 = vmatmul.mubr.msk.f32.vlgmr.msra.gmra.mrb[12].mxu1 %vm218_vm4, %v631_v23  ;;  %v2997_v23 = vcvt.f32.s32 %v2996_v22 }
 0x7ca   :  { %v3464_v24 = vpop.f32.mrb[10].mxu1 }
 0x7cb   :  { %v3466_v25 = vpop.f32.mrb[11].mxu1 }
 0x7cc   :  { %v3061_v26 = vpack.i.bf16 %v3464_v24, %v3466_v25 }
 0x7d2   :  { %v2740_v27 = vpop.f32.mrb[12].mxu1 }
 0x7d3   :  { %v720_v28 = vmul.f32 0.35355338, %v2740_v27  ;;  %v710_v29 = vpop.f32.mrb[13].mxu1 }
 0x7d4   :  { %v719_v30 = vmul.f32 0.35355338, %v710_v29 }
 0x7d5   :  { %v722_v31 = vadd.f32 %v720_v28, %v3414_v3 }
 0x7d6   :  { %v721_v32 = vadd.f32 %v719_v30, %v3412_v0 }
 0x7d7   :  { %v726_v33 = vsel %vm314_vm6, %v722_v31, -inf }
 0x7d8   :  { %727 = vmax.xlane.f32.xlu1 %v726_v33  ;;  %v723_v35 = vsel %vm314_vm6, %v721_v32, -inf }
 0x7d9   :  { %724 = vmax.xlane.f32.xlu0 %v723_v35 }
 0x7e9   :  { %3046 = vrot.lane.b32.xlu1 %v3392_v59, %s3254_s9 }
 0x7ed   :  { %832 = vrot.lane.b32.xlu1 %v3384_v54, %s3255_s10 }
 0x7f1   :  { %834 = vrot.lane.b32.xlu1 %v3386_v57, %s3255_s10 }
 0x865   :  { %v728_v36 = vpop.xlane.xlu1 %727 }
 0x866   :  { %v730_v37 = vsub.f32 %v722_v31, %v728_v36  ;;  %v725_v38 = vpop.xlane.xlu0 %724 }
 0x867   :  { %v729_v41 = vsub.f32 %v721_v32, %v725_v38 }
 0x868   :  { %v733_v42 = vmul.f32 1.442695, %v730_v37 }
 0x869   :  { %v731_v44 = vmul.f32 1.442695, %v729_v41  ;;  %v3047_v46 = vpop.permute.xlu1 %3046 }
 0x86a   :  { %3147 = vpow2.f32 %v733_v42  ;;  %v3049_v48 = vunpack.i.h.bf16 %v3047_v46  ;;  %v3048_v52 = vunpack.i.l.bf16 %v3047_v46 }
 0x86b   :  { %3149 = vpow2.f32 %v731_v44 }
 0x86c   :  { %v2940_v53 = vpack.c.bf16 %v3049_v48, %v3048_v52 }
 0x86d   :  { %v833_v9 = vpop.permute.xlu1 %832 }
 0x86e   :  { %2941 = vmatprep.subr.bf16.mxu1 %v2940_v53 }
 0x86f   :  { %2943 = vmatpush3.bf16.msra.mxu1 %v2940_v53 }
 0x871   :  { %v835_v10 = vpop.permute.xlu1 %834 }
 0x874   :  { %v3148_v55 = vpop.eup %3147 }
 0x875   :  { %v738_v54 = vsel %vm314_vm6, %v3148_v55, 0.0  ;;  %v3150_v56 = vpop.eup %3149 }
 0x876   :  { %739 = vadd.xlane.f32.xlu0 %v738_v54  ;;  %v735_v57 = vsel %vm314_vm6, %v3150_v56, 0.0 }
 0x87a   :  { %736 = vadd.xlane.f32.xlu0 %v735_v57 }
 0x890   :  { %3051 = vrot.lane.b32.xlu0 %v3392_v59, %s3256_s11 }
 0x903   :  { %v740_v58 = vpop.xlane.xlu0 %739 }
 0x904   :  { %3151 = vrcp.f32 %v740_v58  ;;  %v145_v58 = vld [vmem:[%s3877_s2 + $0x30] sm:$0xff] }
 0x907   :  { %v737_v60 = vpop.xlane.xlu0 %736 }
 0x908   :  { %3153 = vrcp.f32 %v737_v60  ;;  %v146_v60 = vld [vmem:[%s3877_s2 + $0x38] sm:$0xff] }
 0x90b   :  { %v3052_v61 = vpop.permute.xlu0 %3051 }
 0x90c   :  { %v3054_v62 = vunpack.i.h.bf16 %v3052_v61  ;;  %v3053_v1 = vunpack.i.l.bf16 %v3052_v61  ;;  %v1069_v61 = vpack.c.bf16 %v146_v60, %v145_v58 }
 0x90e   :  { %v2944_v2 = vpack.c.bf16 %v3054_v62, %v3053_v1  ;;  %v3152_v4 = vpop.eup %3151 }
 0x90f   :  { %v744_v7 = vmul.f32 %v3152_v4, %v3148_v55 }
 0x910   :  { %2946 = vmatprep.subr.msk.bf16.mxu1 %vm3402_vm5, %v2944_v2 }
 0x912   :  { %v3154_v5 = vpop.eup %3153 }
 0x913   :  { %v743_v6 = vmul.f32 %v3154_v5, %v3150_v56  ;;  %v144_v56 = vld [vmem:[%s3877_s2 + $0x28] sm:$0xff] }
 0x915   :  { %2745 = vmatprep.mubr.msk.f32.mxu1 %vm314_vm6, %v743_v6 }
 0x916   :  { %2746 = vmatmul.mubr.msk.f32.vlgmr.msra.gmra.mrb[14].mxu1 %vm314_vm6, %v744_v7 }
 0x917   :  { %2949 = vmatpush3.bf16.xpose.msk.msra.mxu1 %vm3402_vm5, %v2944_v2  ;;  %2752 = vmatprep.mubr.msk.f32.mxu1 %vm218_vm4, %v833_v9 }
 0x918   :  { %2770 = vmatprep.subr.bf16.mxu1 %v3244_v8 }
 0x91e   :  { %2753 = vmatmul.mubr.msk.f32.vlgmr.msra.gmra.mrb[16].mxu1 %vm218_vm4, %v835_v10 }
 0x91f   :  { %2774 = vmatprep.mubr.msk.bf16.mxu1 %vm3246_vm2, %v3244_v8 }
 0x9e9   :  { %v2747_v11 = vpop.f32.mrb[14].mxu1 }
 0x9ea   :  { %v823_v12 = vpop.f32.mrb[15].mxu1 }
 0x9eb   :  { %v3066_v13 = vpack.i.bf16 %v2747_v11, %v823_v12 }
 0x9f1   :  { %v2754_v14 = vpop.f32.mrb[16].mxu1 }
 0x9f2   :  { %v924_v15 = vmul.f32 0.35355338, %v2754_v14  ;;  %v914_v16 = vpop.f32.mrb[17].mxu1 }
 0x9f3   :  { %v923_v17 = vmul.f32 0.35355338, %v914_v16 }
 0x9f4   :  { %v926_v18 = vadd.f32 %v924_v15, %v3414_v3 }
 0x9f5   :  { %v925_v19 = vadd.f32 %v923_v17, %v3412_v0 }
 0x9f6   :  { %v930_v20 = vsel %vm314_vm6, %v926_v18, -inf }
 0x9f7   :  { %931 = vmax.xlane.f32.xlu1 %v930_v20  ;;  %v927_v21 = vsel %vm314_vm6, %v925_v19, -inf }
 0x9f8   :  { %928 = vmax.xlane.f32.xlu0 %v927_v21 }
 0xa08   :  { %23 = vperm.xlu1 %3055, %v2997_v23  }
 0xa0c   :  { %3057 = vrot.lane.b32.xlu1 %v3392_v59, %s3257_s12 }
 0xa10   :  { %3062 = vrot.lane.b32.xlu1 %v3061_v26, %s3258_s13 }
 0xa84   :  { %v932_v27 = vpop.xlane.xlu1 %931 }
 0xa85   :  { %v934_v28 = vsub.f32 %v926_v18, %v932_v27  ;;  %v929_v29 = vpop.xlane.xlu0 %928 }
 0xa86   :  { %v933_v30 = vsub.f32 %v925_v19, %v929_v29 }
 0xa87   :  { %v937_v31 = vmul.f32 1.442695, %v934_v28 }
 0xa88   :  { %v935_v32 = vmul.f32 1.442695, %v933_v30  ;;  %v24_v33 = vpop.permute.xlu1 %23 }
 0xa89   :  { %3155 = vpow2.f32 %v937_v31  ;;  %vm28_vm7 = vcmp.eq.s32.totalorder %v3345_v34, %v24_v33 }
 0xa8a   :  { %3157 = vpow2.f32 %v935_v32  ;;  %v2493_v46 = vsel %vm28_vm7, 1.0, %v3244_v8 }
 0xa8c   :  { %v3058_v43 = vpop.permute.xlu1 %3057 }
 0xa8d   :  { %v3060_v35 = vunpack.i.h.bf16 %v3058_v43  ;;  %v3059_v36 = vunpack.i.l.bf16 %v3058_v43 }
 0xa8f   :  { %v2950_v37 = vpack.c.bf16 %v3060_v35, %v3059_v36 }
 0xa90   :  { %v3063_v4 = vpop.permute.xlu1 %3062 }
 0xa91   :  { %2951 = vmatprep.subr.bf16.mxu0 %v2950_v37  ;;  %v3065_v6 = vunpack.i.h.bf16 %v3063_v4  ;;  %v3064_v7 = vunpack.i.l.bf16 %v3063_v4 }
 0xa92   :  { %2953 = vmatpush3.bf16.msra.mxu0 %v2950_v37 }
 0xa93   :  { %v3156_v59 = vpop.eup %3155  ;;  %2762 = vmatprep.subr.bf16.mxu0 %v3244_v8  ;;  %v1061_v12 = vsel %vm218_vm4, %v3438_v39, %v3065_v6  ;;  %v1072_v39 = vsub.s32 1, %v3373_v49 }
 0xa94   :  { %v942_v24 = vsel %vm314_vm6, %v3156_v59, 0.0  ;;  %v3158_v25 = vpop.eup %3157 }
 0xa95   :  { %943 = vadd.xlane.f32.xlu0 %v942_v24  ;;  %v939_v26 = vsel %vm314_vm6, %v3158_v25, 0.0 }
 0xa99   :  { %940 = vadd.xlane.f32.xlu0 %v939_v26 }
 0xaaf   :  { %35 = vperm.xlu0 %3019, %v2997_v23  }
 0xab3   :  { %3067 = vrot.lane.b32.xlu0 %v3066_v13, %s3259_s14  ;;  %v1060_v13 = vsel %vm218_vm4, %v3440_v40, %v3064_v7  ;;  %v1073_v40 = vrot.slane %v3379_v51, %v1072_v39 }
 0xb22   :  { %v944_v38 = vpop.xlane.xlu0 %943 }
 0xb23   :  { %3159 = vrcp.f32 %v944_v38 }
 0xb26   :  { %v941_v41 = vpop.xlane.xlu0 %940 }
 0xb27   :  { %3161 = vrcp.f32 %v941_v41  ;;  %v148_v41 = vld [vmem:[%s3877_s2 + $0x48] sm:$0xff] }
 0xb2d   :  { %v3160_v44 = vpop.eup %3159 }
 0xb2e   :  { %v36_v42 = vpop.permute.xlu0 %35  ;;  %v948_v54 = vmul.f32 %v3160_v44, %v3156_v59  ;;  %v149_v44 = vld [vmem:[%s3877_s2 + $0x50] sm:$0xff] }
 0xb2f   :  { %vm40_vm8 = vcmp.eq.s32.totalorder %v3345_v34, %v36_v42  ;;  %v143_v34 = vld [vmem:[%s3877_s2 + $0x20] sm:$0xff] }
 0xb30   :  { %v2495_v48 = vsel %vm40_vm8, 1.0, %v3244_v8  ;;  %v1068_v57 = vpack.c.bf16 %v144_v56, %v143_v34 }
 0xb31   :  { %v3162_v52 = vpop.eup %3161  ;;  %v46_v53 = vadd.f32 %v2495_v48, %v2493_v46  ;;  %v150_v46 = vld [vmem:[%s3877_s2 + $0x58] sm:$0xff] }
 0xb32   :  { %v947_v55 = vmul.f32 %v3162_v52, %v3158_v25  ;;  %v3068_v5 = vpop.permute.xlu0 %3067  ;;  %v1161_v48 = vpack.c.bf16 %v150_v46, %v149_v44 }
 0xb33   :  { %2695 = vmatprep.mubr.f32.mxu0 %v46_v53  ;;  %v3070_v9 = vunpack.i.h.bf16 %v3068_v5  ;;  %v3069_v10 = vunpack.i.l.bf16 %v3068_v5 }
 0xb34   :  { %2759 = vmatprep.mubr.msk.f32.mxu0 %vm314_vm6, %v947_v55 }
 0xb35   :  { %2760 = vmatmul.mubr.msk.f32.vlgmr.msra.gmra.mrb[2].mxu0 %vm314_vm6, %v948_v54  ;;  %v1063_v16 = vsel %vm314_vm6, %v1061_v12, %v3070_v9  ;;  %v1062_v17 = vsel %vm314_vm6, %v1060_v13, %v3069_v10  ;;  %v152_v12 = vld [vmem:[%s3877_s2 + $0x68] sm:$0xff] }
 0xb36   :  { %2766 = vmatprep.mubr.msk.bf16.mxu0 %vm3246_vm2, %v3244_v8  ;;  %2763 = vmatpush3.bf16.msra.mxu0 %v1068_v57  ;;  %v1149_v57 = vsub.s32 2, %v3373_v49 }
 0xb37   :  { %2764 = vmatprep.subr.bf16.mxu0 %v3244_v8 }
 0xb38   :  { %v1150_v60 = vrot.slane %v3379_v51, %v1149_v57 }
 0xb3a   :  { %2765 = vmatpush3.bf16.msra.mxu0 %v1069_v61 }
 0xb3b   :  { %2778 = vmatprep.subr.bf16.mxu0 %v3244_v8 }
 0xc08   :  { %v2761_v62 = vpop.f32.mrb[2].mxu0 }
 0xc09   :  { %v1027_v1 = vpop.f32.mrb[3].mxu0 }
 0xc0a   :  { %v3071_v2 = vpack.i.bf16 %v2761_v62, %v1027_v1  ;;  %v1155_v62 = vsub.s32 3, %v3373_v49 }
 0xc0c   :  { %3072 = vrot.lane.b32.xlu1 %v3071_v2, %s3260_s1  ;;  %v1156_v5 = vrot.slane %v3379_v51, %v1155_v62 }
 0xc7e   :  { %v3073_v11 = vpop.permute.xlu1 %3072 }
 0xc7f   :  { %v3075_v14 = vunpack.i.h.bf16 %v3073_v11  ;;  %v3074_v15 = vunpack.i.l.bf16 %v3073_v11  ;;  %v151_v11 = vld [vmem:[%s3877_s2 + $0x60] sm:$0xff] }
 0xc80   :  { %v1221_v13 = vpack.c.bf16 %v152_v12, %v151_v11  ;;  %v1315_v11 = vld [vmem:[%s3877_s2 + $0xb0] sm:$0xff] }
 0xc81   :  { %v1065_v18 = vsel %vm1064_vm9, %v1062_v17, %v3074_v15  ;;  %v1066_v19 = vsel %vm1064_vm9, %v1063_v16, %v3075_v14  ;;  %v153_v14 = vld [vmem:[%s3877_s2 + $0x70] sm:$0xff]  ;;  %v154_v15 = vld [vmem:[%s3877_s2 + $0x78] sm:$0xff]  ;;  %v155_v17 = vld [vmem:[%s3877_s2 + $0x80] sm:$0xff] }
 0xc82   :  { %v1067_v20 = vpack.c.bf16 %v1066_v19, %v1065_v18  ;;  %v1222_v16 = vpack.c.bf16 %v154_v15, %v153_v14  ;;  %v156_v18 = vld [vmem:[%s3877_s2 + $0x88] sm:$0xff]  ;;  %v1317_v14 = vld [vmem:[%s3877_s2 + $0xc0] sm:$0xff] }
 0xc83   :  { %v1223_v19 = vpack.c.bf16 %v156_v18, %v155_v17 }
 0xc84   :  { %2767 = vmatmul.mubr.msk.bf16.vlgmr.msra.gmra.mrb[4].mxu0 %vm167_vm3, %v1067_v20  ;;  %v157_v20 = vld [vmem:[%s3877_s2 + $0x90] sm:$0xff] }
 0xc85   :  { %2786 = vmatprep.mubr.msk.bf16.mxu0 %vm3246_vm2, %v3244_v8  ;;  %2779 = vmatpush3.bf16.msra.mxu0 %v1221_v13  ;;  %v1316_v13 = vld [vmem:[%s3877_s2 + $0xb8] sm:$0xff] }
 0xc86   :  { %2780 = vmatprep.subr.bf16.mxu0 %v3244_v8  ;;  %v1337_v15 = vpack.c.bf16 %v1317_v14, %v1316_v13 }
 0xc89   :  { %2781 = vmatpush3.bf16.msra.mxu0 %v1222_v16 }
 0xc8a   :  { %2782 = vmatprep.subr.bf16.mxu0 %v3244_v8 }
 0xc8d   :  { %2783 = vmatpush3.bf16.msra.mxu0 %v1223_v19 }
 0xc8e   :  { %2784 = vmatprep.subr.bf16.mxu0 %v3244_v8 }
 0xd57   :  { %v1111_v21 = vpop.f32.mrb[4].mxu0 }
 0xd58   :  { %v1112_v22 = vadd.f32 %v1111_v21, %v1073_v40  ;;  %v2768_v23 = vpop.f32.mrb[5].mxu0 }
 0xd59   :  { %v1114_v27 = vpop.f32.mrb[6].mxu0 }
 0xd5a   :  { %v1115_v28 = vadd.f32 %v1114_v27, %v1073_v40  ;;  %v2769_v29 = vpop.f32.mrb[7].mxu0  ;;  %v1118_v30 = vadd.f32 %v1112_v22, %v3368_v47  ;;  %v158_v40 = vld [vmem:[%s3877_s2 + $0x98] sm:$0xff]  ;;  %v1164_v22 = vsub.s32 4, %v3373_v49 }
 0xd5b   :  { %v1224_v21 = vpack.c.bf16 %v158_v40, %v157_v20 }
 0xd5c   :  { %v1120_v31 = vsel %vm167_vm3, %v1118_v30, 0.0  ;;  %v1119_v32 = vadd.f32 %v1115_v28, %v3365_v45  ;;  %v147_v45 = vld [vmem:[%s3877_s2 + $0x40] sm:$0xff]  ;;  %v1165_v23 = vrot.slane %v3379_v51, %v1164_v22 }
 0xd5d   :  { %1121 = vadd.xlane.f32.xlu0 %v1120_v31  ;;  %v1160_v42 = vpack.c.bf16 %v148_v41, %v147_v45  ;;  %2785 = vmatpush3.bf16.msra.mxu0 %v1224_v21  ;;  %v1227_v45 = vsub.s32 5, %v3373_v49  ;;  %v1304_v21 = vsub.s32 6, %v3373_v49 }
 0xd5e   :  { %v1123_v33 = vsel %vm167_vm3, %v1119_v32, 0.0 }
 0xd5f   :  { %1124 = vadd.xlane.f32.xlu1 %v1123_v33  ;;  %2771 = vmatpush3.bf16.msra.mxu1 %v1160_v42  ;;  %v1228_v41 = vrot.slane %v3379_v51, %v1227_v45 }
 0xd60   :  { %2772 = vmatprep.subr.bf16.mxu1 %v3244_v8 }
 0xd63   :  { %2773 = vmatpush3.bf16.msra.mxu1 %v1161_v48 }
 0xd64   :  { %2790 = vmatprep.subr.bf16.mxu1 %v3244_v8 }
 0xdea   :  { %v1122_v43 = vpop.xlane.xlu0 %1121 }
 0xdeb   :  { %v1127_v35 = vmul.f32 0.03125, %v1122_v43 }
 0xdec   :  { %v1125_v36 = vpop.xlane.xlu1 %1124 }
 0xded   :  { %v1129_v37 = vsub.f32 %v1118_v30, %v1127_v35  ;;  %v1128_v59 = vmul.f32 0.03125, %v1125_v36 }
 0xdef   :  { %v1130_v24 = vsub.f32 %v1119_v32, %v1128_v59  ;;  %v1131_v25 = vmul.f32 %v1129_v37, %v1129_v37 }
 0xdf1   :  { %v1133_v26 = vsel %vm167_vm3, %v1131_v25, 0.0  ;;  %v1132_v38 = vmul.f32 %v1130_v24, %v1130_v24 }
 0xdf2   :  { %1134 = vadd.xlane.f32.xlu0 %v1133_v26 }
 0xdf3   :  { %v1136_v47 = vsel %vm167_vm3, %v1132_v38, 0.0 }
 0xdf6   :  { %1137 = vadd.xlane.f32.xlu0 %v1136_v47 }
 0xe7f   :  { %v1135_v52 = vpop.xlane.xlu0 %1134 }
 0xe80   :  { %v1139_v53 = vmul.f32 0.03125, %v1135_v52 }
 0xe82   :  { %v1141_v55 = vadd.f32 1e-05, %v1139_v53 }
 0xe83   :  { %v1138_v54 = vpop.xlane.xlu0 %1137 }
 0xe84   :  { %3163 = vrsqrt.f32 %v1141_v55  ;;  %v1140_v34 = vmul.f32 0.03125, %v1138_v54 }
 0xe86   :  { %v1142_v56 = vadd.f32 1e-05, %v1140_v34 }
 0xe88   :  { %3165 = vrsqrt.f32 %v1142_v56 }
 0xe8e   :  { %v3164_v58 = vpop.eup %3163 }
 0xe8f   :  { %v1145_v61 = vmul.f32 %v3164_v58, %v1129_v37 }
 0xe91   :  { %v1151_v2 = vmul.f32 %v1150_v60, %v1145_v61 }
 0xe92   :  { %v3166_v1 = vpop.eup %3165 }
 0xe93   :  { %v1146_v4 = vmul.f32 %v3166_v1, %v1130_v24  ;;  %v1157_v7 = vadd.f32 %v1156_v5, %v1151_v2 }
 0xe95   :  { %v1152_v6 = vmul.f32 %v1150_v60, %v1146_v4 }
 0xe97   :  { %v1158_v9 = vadd.f32 %v1156_v5, %v1152_v6 }
 0xe99   :  { %v1159_v10 = vpack.c.bf16 %v1158_v9, %v1157_v7 }
 0xe9b   :  { %2775 = vmatmul.mubr.msk.bf16.vlgmr.msra.gmra.mrb[20].mxu1 %vm167_vm3, %v1159_v10 }
 0xe9c   :  { %2794 = vmatprep.mubr.msk.bf16.mxu1 %vm3246_vm2, %v3244_v8 }
 0xf6e   :  { %v1203_v27 = vpop.f32.mrb[20].mxu1 }
 0xf6f   :  { %v1204_v28 = vadd.f32 %v1203_v27, %v1165_v23  ;;  %v2776_v29 = vpop.f32.mrb[21].mxu1  ;;  %v1310_v27 = vsub.s32 7, %v3373_v49 }
 0xf70   :  { %v1206_v30 = vpop.f32.mrb[22].mxu1 }
 0xf71   :  { %v1212_v31 = vmul.f32 0.70710677, %v1204_v28  ;;  %v1207_v32 = vadd.f32 %v1206_v30, %v1165_v23  ;;  %v2777_v33 = vpop.f32.mrb[23].mxu1  ;;  %v1210_v59 = vmul.f32 0.5, %v1204_v28  ;;  %v1305_v23 = vrot.slane %v3379_v51, %v1304_v21 }
 0xf72   :  { %v1311_v33 = vrot.slane %v3379_v51, %v1310_v27 }
 0xf73   :  { %3167 = verf.f32 %v1212_v31  ;;  %v1213_v43 = vmul.f32 0.70710677, %v1207_v32  ;;  %v1211_v24 = vmul.f32 0.5, %v1207_v32 }
 0xf75   :  { %3169 = verf.f32 %v1213_v43 }
 0xf7d   :  { %v3168_v35 = vpop.eup %3167 }
 0xf7e   :  { %v1216_v36 = vadd.f32 1.0, %v3168_v35 }
 0xf7f   :  { %v3170_v37 = vpop.eup %3169 }
 0xf80   :  { %v1217_v25 = vadd.f32 1.0, %v3170_v37  ;;  %v1218_v26 = vmul.f32 %v1216_v36, %v1210_v59  ;;  %v3650_v59 = vld [vmem:[%s3877_s2 + $0x148] sm:$0xff] }
 0xf82   :  { %v1219_v38 = vmul.f32 %v1217_v25, %v1211_v24  ;;  %v1341_v24 = vrot.slane %v3650_v59, %v165_v50 }
 0xf84   :  { %v1220_v47 = vpack.c.bf16 %v1219_v38, %v1218_v26 }
 0xf86   :  { %2787 = vmatmul.mubr.msk.bf16.vlgmr.msra.gmra.mrb[8].mxu0 %vm1229_vm10, %v1220_v47 }
0x1059   :  { %v1267_v42 = vpop.f32.mrb[8].mxu0 }
0x105a   :  { %v1268_v44 = vadd.f32 %v1267_v42, %v1228_v41  ;;  %v2788_v46 = vpop.f32.mrb[9].mxu0 }
0x105b   :  { %v1270_v48 = vpop.f32.mrb[10].mxu0 }
0x105c   :  { %v1271_v52 = vadd.f32 %v1270_v48, %v1228_v41  ;;  %v2789_v53 = vpop.f32.mrb[11].mxu0  ;;  %v1274_v55 = vadd.f32 %v1268_v44, %v1157_v7 }
0x105e   :  { %v1276_v54 = vsel %vm167_vm3, %v1274_v55, 0.0  ;;  %v1275_v34 = vadd.f32 %v1271_v52, %v1158_v9  ;;  %v1314_v9 = vld [vmem:[%s3877_s2 + $0xa8] sm:$0xff] }
0x105f   :  { %1277 = vadd.xlane.f32.xlu1 %v1276_v54  ;;  %v1336_v12 = vpack.c.bf16 %v1315_v11, %v1314_v9 }
0x1060   :  { %v1279_v56 = vsel %vm167_vm3, %v1275_v34, 0.0 }
0x1061   :  { %1280 = vadd.xlane.f32.xlu0 %v1279_v56  ;;  %2791 = vmatpush3.bf16.msra.mxu1 %v1336_v12 }
0x1062   :  { %2792 = vmatprep.subr.bf16.mxu1 %v3244_v8 }
0x1065   :  { %2793 = vmatpush3.bf16.msra.mxu1 %v1337_v15 }
0x10ec   :  { %v1278_v58 = vpop.xlane.xlu1 %1277 }
0x10ed   :  { %v1282_v60 = vmul.f32 0.03125, %v1278_v58 }
0x10ee   :  { %v1281_v61 = vpop.xlane.xlu0 %1280 }
0x10ef   :  { %v1284_v1 = vsub.f32 %v1274_v55, %v1282_v60  ;;  %v1283_v2 = vmul.f32 0.03125, %v1281_v61 }
0x10f1   :  { %v1285_v4 = vsub.f32 %v1275_v34, %v1283_v2  ;;  %v1286_v5 = vmul.f32 %v1284_v1, %v1284_v1 }
0x10f3   :  { %v1288_v6 = vsel %vm167_vm3, %v1286_v5, 0.0  ;;  %v1287_v10 = vmul.f32 %v1285_v4, %v1285_v4 }
0x10f4   :  { %1289 = vadd.xlane.f32.xlu1 %v1288_v6 }
0x10f5   :  { %v1291_v7 = vsel %vm167_vm3, %v1287_v10, 0.0 }
0x10f6   :  { %1292 = vadd.xlane.f32.xlu0 %v1291_v7 }
0x1181   :  { %v1290_v16 = vpop.xlane.xlu1 %1289 }
0x1182   :  { %v1294_v17 = vmul.f32 0.03125, %v1290_v16 }
0x1183   :  { %v1293_v18 = vpop.xlane.xlu0 %1292 }
0x1184   :  { %v1296_v19 = vadd.f32 1e-05, %v1294_v17  ;;  %v1295_v20 = vmul.f32 0.03125, %v1293_v18 }
0x1186   :  { %3171 = vrsqrt.f32 %v1296_v19  ;;  %v1297_v40 = vadd.f32 1e-05, %v1295_v20 }
0x1188   :  { %3173 = vrsqrt.f32 %v1297_v40 }
0x1190   :  { %v3172_v28 = vpop.eup %3171 }
0x1191   :  { %v1300_v29 = vmul.f32 %v3172_v28, %v1284_v1 }
0x1192   :  { %v3174_v30 = vpop.eup %3173 }
0x1193   :  { %v1306_v31 = vmul.f32 %v1305_v23, %v1300_v29  ;;  %v1301_v32 = vmul.f32 %v3174_v30, %v1285_v4 }
0x1195   :  { %v1307_v43 = vmul.f32 %v1305_v23, %v1301_v32  ;;  %v3640_v35 = vadd.f32 %v1311_v33, %v1306_v31 }
0x1197   :  { %v3642_v36 = vadd.f32 %v1311_v33, %v1307_v43 }
0x1199   :  { %v1335_v37 = vpack.c.bf16 %v3642_v36, %v3640_v35 }
0x119b   :  { %2795 = vmatmul.mubr.msk.bf16.vlgmr.msra.gmra.mrb[24].mxu1 %vm167_vm3, %v1335_v37 }
0x126e   :  { %v1379_v51 = vpop.f32.mrb[24].mxu1 }
0x126f   :  { %v3655_v25 = vadd.f32 %v1379_v51, %v1341_v24  ;;  %v2796_v26 = vpop.f32.mrb[25].mxu1 }
0x1270   :  { %v1382_v38 = vpop.f32.mrb[26].mxu1 }
0x1271   :  { %v3657_v47 = vadd.f32 %v1382_v38, %v1341_v24  ;;  %v2797_v41 = vpop.f32.mrb[27].mxu1  ;;  %2802 = vmatprep.mubr.msk.f32.mxu1 %vm218_vm4, %v3655_v25 }
0x1273   :  { %v3663_v42 = vpack.i.bf16 %v3657_v47, %v3655_v25 }
0x1275   :  { %3082 = vrot.lane.b32.xlu0 %v3663_v42, %s3250_s5  ;;  %3077 = vrot.lane.b32.xlu1 %v3663_v42, %s3247_s29 }
0x1279   :  { %1590 = vrot.lane.b32.xlu0 %v3657_v47, %s3249_s4  ;;  %1588 = vrot.lane.b32.xlu1 %v3655_v25, %s3249_s4 }
0x127d   :  { %1794 = vrot.lane.b32.xlu0 %v3657_v47, %s3252_s7  ;;  %3087 = vrot.lane.b32.xlu1 %v3663_v42, %s3253_s8 }
0x1281   :  { %1792 = vrot.lane.b32.xlu1 %v3655_v25, %s3252_s7 }
0x12e7   :  { %v3083_v50 = vpop.permute.xlu0 %3082  ;;  %v3078_v44 = vpop.permute.xlu1 %3077 }
0x12e8   :  { %v3085_v46 = vunpack.i.h.bf16 %v3083_v50  ;;  %v3084_v48 = vunpack.i.l.bf16 %v3083_v50  ;;  %v3080_v52 = vunpack.i.h.bf16 %v3078_v44  ;;  %v3079_v53 = vunpack.i.l.bf16 %v3078_v44 }
0x12ea   :  { %v2964_v55 = vpack.c.bf16 %v3085_v46, %v3084_v48  ;;  %v2954_v54 = vpack.c.bf16 %v3080_v52, %v3079_v53 }
0x12eb   :  { %v1589_v34 = vpop.permute.xlu1 %1588  ;;  %v1591_v2 = vpop.permute.xlu0 %1590 }
0x12ec   :  { %2956 = vmatprep.subr.msk.bf16.mxu1 %vm3402_vm5, %v2954_v54  ;;  %2966 = vmatprep.subr.msk.bf16.mxu0 %vm3402_vm5, %v2964_v55 }
0x12ed   :  { %2816 = vmatprep.mubr.msk.f32.mxu0 %vm218_vm4, %v1589_v34  ;;  %2959 = vmatpush3.bf16.xpose.msk.msra.mxu1 %vm3402_vm5, %v2954_v54 }
0x12ee   :  { %2969 = vmatpush3.bf16.xpose.msk.msra.mxu0 %vm3402_vm5, %v2964_v55 }
0x12ef   :  { %v3088_v56 = vpop.permute.xlu1 %3087  ;;  %v1795_v4 = vpop.permute.xlu0 %1794 }
0x12f0   :  { %v3090_v58 = vunpack.i.h.bf16 %v3088_v56  ;;  %v3089_v60 = vunpack.i.l.bf16 %v3088_v56 }
0x12f2   :  { %v2974_v61 = vpack.c.bf16 %v3090_v58, %v3089_v60 }
0x12f3   :  { %v1793_v1 = vpop.permute.xlu1 %1792 }
0x12f4   :  { %2803 = vmatmul.mubr.msk.f32.vlgmr.msra.gmra.mrb[18].mxu1 %vm218_vm4, %v3657_v47  ;;  %2976 = vmatprep.subr.msk.bf16.mxu0 %vm3402_vm5, %v2974_v61 }
0x12f5   :  { %2817 = vmatmul.mubr.msk.f32.vlgmr.msra.gmra.mrb[12].mxu0 %vm218_vm4, %v1591_v2 }
0x12f6   :  { %2979 = vmatpush3.bf16.xpose.msk.msra.mxu0 %vm3402_vm5, %v2974_v61  ;;  %2830 = vmatprep.mubr.msk.f32.mxu0 %vm218_vm4, %v1793_v1 }
0x12fd   :  { %2831 = vmatmul.mubr.msk.f32.vlgmr.msra.gmra.mrb[14].mxu0 %vm218_vm4, %v1795_v4 }
0x13c7   :  { %v2804_v5 = vpop.f32.mrb[18].mxu1 }
0x13c8   :  { %v1476_v6 = vmul.f32 0.35355338, %v2804_v5  ;;  %v2818_v10 = vpop.f32.mrb[12].mxu0  ;;  %v1466_v7 = vpop.f32.mrb[19].mxu1 }
0x13c9   :  { %v1680_v9 = vmul.f32 0.35355338, %v2818_v10  ;;  %v1475_v11 = vmul.f32 0.35355338, %v1466_v7  ;;  %v1670_v12 = vpop.f32.mrb[13].mxu0 }
0x13ca   :  { %v1679_v13 = vmul.f32 0.35355338, %v1670_v12  ;;  %v1478_v14 = vadd.f32 %v1476_v6, %v3414_v3 }
0x13cb   :  { %v1477_v15 = vadd.f32 %v1475_v11, %v3412_v0  ;;  %v1682_v19 = vadd.f32 %v1680_v9, %v3414_v3 }
0x13cc   :  { %v1482_v16 = vsel %vm314_vm6, %v1478_v14, -inf  ;;  %v1681_v17 = vadd.f32 %v1679_v13, %v3412_v0 }
0x13cd   :  { %1483 = vmax.xlane.f32.xlu0 %v1482_v16  ;;  %v1479_v18 = vsel %vm314_vm6, %v1477_v15, -inf  ;;  %v1686_v29 = vsel %vm314_vm6, %v1682_v19, -inf }
0x13ce   :  { %1480 = vmax.xlane.f32.xlu1 %v1479_v18  ;;  %v1683_v40 = vsel %vm314_vm6, %v1681_v17, -inf }
0x13d0   :  { %v2832_v20 = vpop.f32.mrb[14].mxu0 }
0x13d1   :  { %v1884_v23 = vmul.f32 0.35355338, %v2832_v20  ;;  %v1874_v28 = vpop.f32.mrb[15].mxu0  ;;  %1684 = vmax.xlane.f32.xlu0 %v1683_v40 }
0x13d2   :  { %v1883_v30 = vmul.f32 0.35355338, %v1874_v28  ;;  %1687 = vmax.xlane.f32.xlu1 %v1686_v29 }
0x13d3   :  { %v1886_v31 = vadd.f32 %v1884_v23, %v3414_v3 }
0x13d4   :  { %v1885_v32 = vadd.f32 %v1883_v30, %v3412_v0 }
0x13d5   :  { %v1890_v33 = vsel %vm314_vm6, %v1886_v31, -inf }
0x13d6   :  { %1891 = vmax.xlane.f32.xlu1 %v1890_v33  ;;  %v1887_v43 = vsel %vm314_vm6, %v1885_v32, -inf }
0x13d7   :  { %1888 = vmax.xlane.f32.xlu0 %v1887_v43 }
0x13e7   :  { %3097 = vrot.lane.b32.xlu1 %v3663_v42, %s3251_s6 }
0x13ed   :  { %3092 = vrot.lane.b32.xlu0 %v3663_v42, %s3248_s30 }
0x145a   :  { %v1484_v37 = vpop.xlane.xlu0 %1483 }
0x145b   :  { %v1486_v24 = vsub.f32 %v1478_v14, %v1484_v37  ;;  %v1481_v51 = vpop.xlane.xlu1 %1480 }
0x145c   :  { %v1485_v26 = vsub.f32 %v1477_v15, %v1481_v51 }
0x145d   :  { %v1489_v38 = vmul.f32 1.442695, %v1486_v24 }
0x145e   :  { %v1487_v41 = vmul.f32 1.442695, %v1485_v26  ;;  %v1685_v50 = vpop.xlane.xlu0 %1684 }
0x145f   :  { %3175 = vpow2.f32 %v1489_v38  ;;  %v1689_v44 = vsub.f32 %v1681_v17, %v1685_v50  ;;  %v1688_v46 = vpop.xlane.xlu1 %1687 }
0x1460   :  { %3177 = vpow2.f32 %v1487_v41  ;;  %v1690_v48 = vsub.f32 %v1682_v19, %v1688_v46 }
0x1461   :  { %v1691_v52 = vmul.f32 1.442695, %v1689_v44 }
0x1462   :  { %v1693_v53 = vmul.f32 1.442695, %v1690_v48 }
0x1463   :  { %3179 = vpow2.f32 %v1691_v52  ;;  %v1892_v55 = vpop.xlane.xlu1 %1891 }
0x1464   :  { %3181 = vpow2.f32 %v1693_v53  ;;  %v1889_v54 = vpop.xlane.xlu0 %1888  ;;  %v1894_v18 = vsub.f32 %v1886_v31, %v1892_v55 }
0x1465   :  { %v1893_v34 = vsub.f32 %v1885_v32, %v1889_v54 }
0x1466   :  { %v1897_v19 = vmul.f32 1.442695, %v1894_v18 }
0x1467   :  { %v1895_v56 = vmul.f32 1.442695, %v1893_v34  ;;  %v3098_v58 = vpop.permute.xlu1 %3097 }
0x1468   :  { %v3100_v60 = vunpack.i.h.bf16 %v3098_v58  ;;  %v3093_v61 = vpop.permute.xlu0 %3092  ;;  %v3099_v2 = vunpack.i.l.bf16 %v3098_v58 }
0x1469   :  { %v3176_v1 = vpop.eup %3175  ;;  %3183 = vpow2.f32 %v1895_v56  ;;  %v3095_v4 = vunpack.i.h.bf16 %v3093_v61  ;;  %v3094_v5 = vunpack.i.l.bf16 %v3093_v61 }
0x146a   :  { %v3178_v6 = vpop.eup %3177  ;;  %v1494_v10 = vsel %vm314_vm6, %v3176_v1, 0.0  ;;  %v2970_v12 = vpack.c.bf16 %v3100_v60, %v3099_v2  ;;  %3185 = vpow2.f32 %v1897_v19 }
0x146b   :  { %v2960_v7 = vpack.c.bf16 %v3095_v4, %v3094_v5  ;;  %1495 = vadd.xlane.f32.xlu1 %v1494_v10  ;;  %v1491_v9 = vsel %vm314_vm6, %v3178_v6, 0.0 }
0x146c   :  { %1492 = vadd.xlane.f32.xlu0 %v1491_v9 }
0x146d   :  { %v3180_v11 = vpop.eup %3179  ;;  %2961 = vmatprep.subr.bf16.mxu1 %v2960_v7 }
0x146e   :  { %v3182_v13 = vpop.eup %3181  ;;  %2963 = vmatpush3.bf16.msra.mxu1 %v2960_v7  ;;  %v1695_v14 = vsel %vm314_vm6, %v3180_v11, 0.0 }
0x146f   :  { %2971 = vmatprep.subr.bf16.mxu1 %v2970_v12  ;;  %v1698_v15 = vsel %vm314_vm6, %v3182_v13, 0.0 }
0x1470   :  { %1699 = vadd.xlane.f32.xlu1 %v1698_v15  ;;  %1696 = vadd.xlane.f32.xlu0 %v1695_v14 }
0x1473   :  { %v3184_v16 = vpop.eup %3183 }
0x1474   :  { %v1899_v17 = vsel %vm314_vm6, %v3184_v16, 0.0  ;;  %v3186_v20 = vpop.eup %3185 }
0x1475   :  { %1900 = vadd.xlane.f32.xlu0 %v1899_v17  ;;  %v1902_v40 = vsel %vm314_vm6, %v3186_v20, 0.0 }
0x1481   :  { %3102 = vrot.lane.b32.xlu1 %v3663_v42, %s3254_s9 }
0x148b   :  { %3107 = vrot.lane.b32.xlu0 %v3663_v42, %s3256_s11 }
0x148f   :  { %1998 = vrot.lane.b32.xlu0 %v3657_v47, %s3255_s10 }
0x14a5   :  { %1903 = vadd.xlane.f32.xlu1 %v1902_v40 }
0x14b6   :  { %1996 = vrot.lane.b32.xlu1 %v3655_v25, %s3255_s10 }
0x14f8   :  { %v1496_v23 = vpop.xlane.xlu1 %1495 }
0x14f9   :  { %3187 = vrcp.f32 %v1496_v23  ;;  %v1493_v28 = vpop.xlane.xlu0 %1492 }
0x14fa   :  { %3189 = vrcp.f32 %v1493_v28 }
0x14fd   :  { %v1700_v29 = vpop.xlane.xlu1 %1699  ;;  %v1697_v30 = vpop.xlane.xlu0 %1696 }
0x14fe   :  { %3191 = vrcp.f32 %v1700_v29 }
0x14ff   :  { %3193 = vrcp.f32 %v1697_v30 }
0x1501   :  { %v3103_v31 = vpop.permute.xlu1 %3102 }
0x1502   :  { %v1901_v32 = vpop.xlane.xlu0 %1900  ;;  %v3105_v43 = vunpack.i.h.bf16 %v3103_v31  ;;  %v3104_v37 = vunpack.i.l.bf16 %v3103_v31 }
0x1503   :  { %v3188_v47 = vpop.eup %3187  ;;  %3195 = vrcp.f32 %v1901_v32 }
0x1504   :  { %v3190_v33 = vpop.eup %3189  ;;  %v1500_v51 = vmul.f32 %v3188_v47, %v3176_v1  ;;  %v2980_v38 = vpack.c.bf16 %v3105_v43, %v3104_v37 }
0x1505   :  { %v1499_v24 = vmul.f32 %v3190_v33, %v3178_v6 }
0x1506   :  { %v3108_v26 = vpop.permute.xlu0 %3107 }
0x1507   :  { %2809 = vmatprep.mubr.msk.f32.mxu1 %vm314_vm6, %v1499_v24  ;;  %v3110_v44 = vunpack.i.h.bf16 %v3108_v26  ;;  %v3109_v46 = vunpack.i.l.bf16 %v3108_v26 }
0x1508   :  { %v3192_v25 = vpop.eup %3191  ;;  %2810 = vmatmul.mubr.msk.f32.vlgmr.msra.gmra.mrb[28].mxu1 %vm314_vm6, %v1500_v51 }
0x1509   :  { %v3194_v41 = vpop.eup %3193  ;;  %v1704_v50 = vmul.f32 %v3192_v25, %v3182_v13  ;;  %2973 = vmatpush3.bf16.msra.mxu1 %v2970_v12  ;;  %v2984_v53 = vpack.c.bf16 %v3110_v44, %v3109_v46  ;;  %v1319_v25 = vld [vmem:[%s3877_s2 + $0xd0] sm:$0xff] }
0x150a   :  { %2981 = vmatprep.subr.bf16.mxu1 %v2980_v38  ;;  %v1703_v48 = vmul.f32 %v3194_v41, %v3180_v11  ;;  %v1999_v60 = vpop.permute.xlu0 %1998  ;;  %v1320_v41 = vld [vmem:[%s3877_s2 + $0xd8] sm:$0xff] }
0x150c   :  { %2823 = vmatprep.mubr.msk.f32.mxu1 %vm314_vm6, %v1703_v48 }
0x150d   :  { %v3196_v52 = vpop.eup %3195  ;;  %2824 = vmatmul.mubr.msk.f32.vlgmr.msra.gmra.mrb[30].mxu1 %vm314_vm6, %v1704_v50  ;;  %v1321_v50 = vld [vmem:[%s3877_s2 + $0xe0] sm:$0xff] }
0x150e   :  { %2983 = vmatpush3.bf16.msra.mxu1 %v2980_v38  ;;  %v1907_v55 = vmul.f32 %v3196_v52, %v3184_v16  ;;  %v2232_v44 = vpack.c.bf16 %v1321_v50, %v1320_v41  ;;  %v2312_v41 = vrot.slane %v3650_v59, %v1149_v57  ;;  %v1327_v57 = vld [vmem:[%s3877_s2 + $0x110] sm:$0xff] }
0x150f   :  { %2986 = vmatprep.subr.msk.bf16.mxu1 %vm3402_vm5, %v2984_v53 }
0x1510   :  { %2837 = vmatprep.mubr.msk.f32.mxu1 %vm314_vm6, %v1907_v55 }
0x1532   :  { %v1904_v54 = vpop.xlane.xlu1 %1903 }
0x1533   :  { %3197 = vrcp.f32 %v1904_v54 }
0x1536   :  { %v1997_v58 = vpop.permute.xlu1 %1996 }
0x153d   :  { %v3198_v34 = vpop.eup %3197 }
0x153e   :  { %v1908_v56 = vmul.f32 %v3198_v34, %v3186_v20 }
0x1540   :  { %2838 = vmatmul.mubr.msk.f32.vlgmr.msra.gmra.mrb[32].mxu1 %vm314_vm6, %v1908_v56 }
0x1541   :  { %2989 = vmatpush3.bf16.xpose.msk.msra.mxu1 %vm3402_vm5, %v2984_v53  ;;  %2844 = vmatprep.mubr.msk.f32.mxu1 %vm218_vm4, %v1997_v58 }
0x1542   :  { %2862 = vmatprep.subr.bf16.mxu1 %v3244_v8 }
0x1548   :  { %2845 = vmatmul.mubr.msk.f32.vlgmr.msra.gmra.mrb[34].mxu1 %vm218_vm4, %v1999_v60 }
0x1549   :  { %2866 = vmatprep.mubr.msk.bf16.mxu1 %vm3246_vm2, %v3244_v8 }
0x15db   :  { %v3742_v61 = vpop.f32.mrb[28].mxu1 }
0x15dc   :  { %v3744_v1 = vpop.f32.mrb[29].mxu1 }
0x15e0   :  { %v2825_v2 = vpop.f32.mrb[30].mxu1 }
0x15e1   :  { %v1783_v4 = vpop.f32.mrb[31].mxu1 }
0x15e2   :  { %v3116_v5 = vpack.i.bf16 %v2825_v2, %v1783_v4 }
0x1613   :  { %v2839_v6 = vpop.f32.mrb[32].mxu1 }
0x1614   :  { %v1987_v63 = vpop.f32.mrb[33].mxu1 }
0x1615   :  { %v3121_v10 = vpack.i.bf16 %v2839_v6, %v1987_v63 }
0x161b   :  { %v2846_v7 = vpop.f32.mrb[34].mxu1 }
0x161c   :  { %v2088_v9 = vmul.f32 0.35355338, %v2846_v7  ;;  %v2078_v11 = vpop.f32.mrb[35].mxu1 }
0x161d   :  { %v2087_v12 = vmul.f32 0.35355338, %v2078_v11 }
0x161e   :  { %v2090_v13 = vadd.f32 %v2088_v9, %v3414_v3 }
0x161f   :  { %v2089_v14 = vadd.f32 %v2087_v12, %v3412_v0 }
0x1620   :  { %v2094_v15 = vsel %vm314_vm6, %v2090_v13, -inf }
0x1621   :  { %2095 = vmax.xlane.f32.xlu0 %v2094_v15  ;;  %v2091_v16 = vsel %vm314_vm6, %v2089_v14, -inf }
0x1622   :  { %2092 = vmax.xlane.f32.xlu1 %v2091_v16 }
0x16ae   :  { %v2096_v17 = vpop.xlane.xlu0 %2095 }
0x16af   :  { %v2098_v18 = vsub.f32 %v2090_v13, %v2096_v17  ;;  %v2093_v19 = vpop.xlane.xlu1 %2092 }
0x16b0   :  { %v2097_v20 = vsub.f32 %v2089_v14, %v2093_v19 }
0x16b1   :  { %v2101_v40 = vmul.f32 1.442695, %v2098_v18 }
0x16b2   :  { %v2099_v23 = vmul.f32 1.442695, %v2097_v20 }
0x16b3   :  { %3199 = vpow2.f32 %v2101_v40 }
0x16b4   :  { %3201 = vpow2.f32 %v2099_v23 }
0x16bd   :  { %v3200_v28 = vpop.eup %3199 }
0x16be   :  { %v3202_v29 = vpop.eup %3201  ;;  %v2106_v3 = vsel %vm314_vm6, %v3200_v28, 0.0 }
0x16bf   :  { %2107 = vadd.xlane.f32.xlu1 %v2106_v3  ;;  %v2103_v0 = vsel %vm314_vm6, %v3202_v29, 0.0 }
0x16c0   :  { %2104 = vadd.xlane.f32.xlu0 %v2103_v0 }
0x16d0   :  { %3117 = vrot.lane.b32.xlu1 %v3116_v5, %s3258_s13 }
0x16d4   :  { %3122 = vrot.lane.b32.xlu1 %v3121_v10, %s3259_s14 }
0x16d6   :  { %3112 = vrot.lane.b32.xlu0 %v3663_v42, %s3257_s12  ;;  %v1318_v42 = vld [vmem:[%s3877_s2 + $0xc8] sm:$0xff] }
0x16d7   :  { %v2231_v38 = vpack.c.bf16 %v1319_v25, %v1318_v42 }
0x174c   :  { %v2108_v30 = vpop.xlane.xlu1 %2107 }
0x174d   :  { %3203 = vrcp.f32 %v2108_v30  ;;  %v2105_v31 = vpop.xlane.xlu0 %2104 }
0x174e   :  { %3205 = vrcp.f32 %v2105_v31 }
0x1750   :  { %v3118_v53 = vpop.permute.xlu1 %3117 }
0x1751   :  { %v3113_v32 = vpop.permute.xlu0 %3112  ;;  %v3120_v54 = vunpack.i.h.bf16 %v3118_v53  ;;  %v3119_v34 = vunpack.i.l.bf16 %v3118_v53  ;;  %v2318_v53 = vrot.slane %v3650_v59, %v1155_v62  ;;  %v1328_v62 = vld [vmem:[%s3877_s2 + $0x118] sm:$0xff] }
0x1752   :  { %v3115_v47 = vunpack.i.h.bf16 %v3113_v32  ;;  %v3114_v33 = vunpack.i.l.bf16 %v3113_v32  ;;  %v1323_v32 = vld [vmem:[%s3877_s2 + $0xf0] sm:$0xff] }
0x1753   :  { %v2225_v2 = vsel %vm218_vm4, %v3742_v61, %v3120_v54  ;;  %v2224_v4 = vsel %vm218_vm4, %v3744_v1, %v3119_v34  ;;  %v2236_v61 = vrot.slane %v3650_v59, %v1072_v39 }
0x1754   :  { %v2990_v43 = vpack.c.bf16 %v3115_v47, %v3114_v33  ;;  %v3123_v55 = vpop.permute.xlu1 %3122  ;;  %v1324_v33 = vld [vmem:[%s3877_s2 + $0xf8] sm:$0xff] }
0x1755   :  { %v3125_v56 = vunpack.i.h.bf16 %v3123_v55  ;;  %v3124_v58 = vunpack.i.l.bf16 %v3123_v55 }
0x1756   :  { %2991 = vmatprep.subr.bf16.mxu0 %v2990_v43 }
0x1757   :  { %v3204_v37 = vpop.eup %3203  ;;  %2993 = vmatpush3.bf16.msra.mxu0 %v2990_v43  ;;  %v2226_v63 = vsel %vm314_vm6, %v2224_v4, %v3124_v58  ;;  %v2227_v10 = vsel %vm314_vm6, %v2225_v2, %v3125_v56  ;;  %v1325_v43 = vld [vmem:[%s3877_s2 + $0x100] sm:$0xff]  ;;  %v1326_v58 = vld [vmem:[%s3877_s2 + $0x108] sm:$0xff] }
0x1758   :  { %v3206_v24 = vpop.eup %3205  ;;  %2854 = vmatprep.subr.bf16.mxu0 %v3244_v8  ;;  %v2112_v26 = vmul.f32 %v3204_v37, %v3200_v28  ;;  %v2323_v37 = vpack.c.bf16 %v1325_v43, %v1324_v33  ;;  %v1329_v2 = vld [vmem:[%s3877_s2 + $0x120] sm:$0xff] }
0x1759   :  { %v2111_v51 = vmul.f32 %v3206_v24, %v3202_v29  ;;  %v2384_v4 = vpack.c.bf16 %v1329_v2, %v1328_v62 }
0x175b   :  { %2851 = vmatprep.mubr.msk.f32.mxu0 %vm314_vm6, %v2111_v51 }
0x175c   :  { %2852 = vmatmul.mubr.msk.f32.vlgmr.msra.gmra.mrb[16].mxu0 %vm314_vm6, %v2112_v26 }
0x175d   :  { %2858 = vmatprep.mubr.msk.bf16.mxu0 %vm3246_vm2, %v3244_v8  ;;  %2855 = vmatpush3.bf16.msra.mxu0 %v2231_v38 }
0x175e   :  { %2856 = vmatprep.subr.bf16.mxu0 %v3244_v8 }
0x1761   :  { %2857 = vmatpush3.bf16.msra.mxu0 %v2232_v44 }
0x1762   :  { %2870 = vmatprep.subr.bf16.mxu0 %v3244_v8 }
0x182f   :  { %v2853_v46 = vpop.f32.mrb[16].mxu0 }
0x1830   :  { %v2191_v48 = vpop.f32.mrb[17].mxu0 }
0x1831   :  { %v3126_v52 = vpack.i.bf16 %v2853_v46, %v2191_v48 }
0x1833   :  { %3127 = vrot.lane.b32.xlu0 %v3126_v52, %s3260_s1 }
0x18a5   :  { %v3128_v60 = vpop.permute.xlu0 %3127 }
0x18a6   :  { %v3130_v5 = vunpack.i.h.bf16 %v3128_v60  ;;  %v3129_v6 = vunpack.i.l.bf16 %v3128_v60  ;;  %v2383_v60 = vpack.c.bf16 %v1327_v57, %v1326_v58  ;;  %v2472_v58 = vrot.slane %v3650_v59, %v1310_v27 }
0x18a8   :  { %v2228_v7 = vsel %vm1064_vm9, %v2226_v63, %v3129_v6  ;;  %v2229_v9 = vsel %vm1064_vm9, %v2227_v10, %v3130_v5  ;;  %v1330_v5 = vld [vmem:[%s3877_s2 + $0x128] sm:$0xff]  ;;  %v1331_v6 = vld [vmem:[%s3877_s2 + $0x130] sm:$0xff]  ;;  %v1332_v10 = vld [vmem:[%s3877_s2 + $0x138] sm:$0xff] }
0x18a9   :  { %v2230_v11 = vpack.c.bf16 %v2229_v9, %v2228_v7  ;;  %v2385_v63 = vpack.c.bf16 %v1331_v6, %v1330_v5  ;;  %v1333_v7 = vld [vmem:[%s3877_s2 + $0x140] sm:$0xff] }
0x18aa   :  { %v2386_v9 = vpack.c.bf16 %v1333_v7, %v1332_v10 }
0x18ab   :  { %2859 = vmatmul.mubr.msk.bf16.vlgmr.msra.gmra.mrb[20].mxu0 %vm167_vm3, %v2230_v11  ;;  %v2327_v11 = vrot.slane %v3650_v59, %v1164_v22  ;;  %v2390_v22 = vrot.slane %v3650_v59, %v1227_v45 }
0x18ac   :  { %2878 = vmatprep.mubr.msk.bf16.mxu0 %vm3246_vm2, %v3244_v8  ;;  %2871 = vmatpush3.bf16.msra.mxu0 %v2383_v60 }
0x18ad   :  { %2872 = vmatprep.subr.bf16.mxu0 %v3244_v8 }
0x18b0   :  { %2873 = vmatpush3.bf16.msra.mxu0 %v2384_v4 }
0x18b1   :  { %2874 = vmatprep.subr.bf16.mxu0 %v3244_v8 }
0x18b4   :  { %2875 = vmatpush3.bf16.msra.mxu0 %v2385_v63 }
0x18b5   :  { %2876 = vmatprep.subr.bf16.mxu0 %v3244_v8 }
0x18b8   :  { %2877 = vmatpush3.bf16.msra.mxu0 %v2386_v9 }
0x197e   :  { %v2274_v1 = vpop.f32.mrb[20].mxu0 }
0x197f   :  { %v2275_v12 = vadd.f32 %v2274_v1, %v2236_v61  ;;  %v2860_v13 = vpop.f32.mrb[21].mxu0 }
0x1980   :  { %v2277_v14 = vpop.f32.mrb[22].mxu0 }
0x1981   :  { %v2278_v15 = vadd.f32 %v2277_v14, %v2236_v61  ;;  %v2861_v16 = vpop.f32.mrb[23].mxu0  ;;  %v2281_v17 = vadd.f32 %v2275_v12, %v3640_v35 }
0x1983   :  { %v2283_v18 = vsel %vm167_vm3, %v2281_v17, 0.0  ;;  %v2282_v19 = vadd.f32 %v2278_v15, %v3642_v36  ;;  %v1322_v36 = vld [vmem:[%s3877_s2 + $0xe8] sm:$0xff]  ;;  %s3261_s2 = smov [#allocation2]  }
0x1984   :  { %2284 = vadd.xlane.f32.xlu1 %v2283_v18  ;;  %v2322_v47 = vpack.c.bf16 %v1323_v32, %v1322_v36  ;;  %s2482_s6 = sshll.u32 %s3261_s2, 4  ;;  %s2483_s6 = int_to_ptr.vmem [resolvable:$true] %s2482_s6 }
0x1985   :  { %v2286_v20 = vsel %vm167_vm3, %v2282_v19, 0.0  ;;  %s3219_s7 = scalar_lea.vmem %s2483_s6, 256  ;;  %p3224_p1 = scmp.lt.s32.totalorder %s2483_s6, %s2483_s6 }
0x1986   :  { %2287 = vadd.xlane.f32.xlu0 %v2286_v20  ;;  %2863 = vmatpush3.bf16.msra.mxu1 %v2322_v47  ;;  %p3220_p0 = scmp.ne.s32.totalorder %s2483_s6, %s3219_s7  ;;  %p3225_p2 = scmp.lt.s32.totalorder %s3219_s7, %s3219_s7 }
0x1987   :  { %2864 = vmatprep.subr.bf16.mxu1 %v3244_v8 }
0x1988   :  { %p3226_p3 = por %p3225_p2, %p3224_p1 }
0x198a   :  { %2865 = vmatpush3.bf16.msra.mxu1 %v2323_v37  ;;  %p3227_p4 = pnand %p3226_p3, %p3220_p0 }
0x1a11   :  { %v2285_v40 = vpop.xlane.xlu1 %2284 }
0x1a12   :  { %v2289_v23 = vmul.f32 0.03125, %v2285_v40 }
0x1a13   :  { %v2288_v28 = vpop.xlane.xlu0 %2287 }
0x1a14   :  { %v2291_v39 = vsub.f32 %v2281_v17, %v2289_v23  ;;  %v2290_v29 = vmul.f32 0.03125, %v2288_v28 }
0x1a16   :  { %v2292_v3 = vsub.f32 %v2282_v19, %v2290_v29  ;;  %v2293_v0 = vmul.f32 %v2291_v39, %v2291_v39 }
0x1a18   :  { %v2295_v30 = vsel %vm167_vm3, %v2293_v0, 0.0  ;;  %v2294_v31 = vmul.f32 %v2292_v3, %v2292_v3 }
0x1a19   :  { %2296 = vadd.xlane.f32.xlu0 %v2295_v30 }
0x1a1a   :  { %v2298_v35 = vsel %vm167_vm3, %v2294_v31, 0.0 }
0x1a1b   :  { %2299 = vadd.xlane.f32.xlu1 %v2298_v35 }
0x1aa6   :  { %v2297_v24 = vpop.xlane.xlu0 %2296 }
0x1aa7   :  { %v2301_v51 = vmul.f32 0.03125, %v2297_v24 }
0x1aa8   :  { %v2300_v26 = vpop.xlane.xlu1 %2299 }
0x1aa9   :  { %v2303_v42 = vadd.f32 1e-05, %v2301_v51  ;;  %v2302_v25 = vmul.f32 0.03125, %v2300_v26 }
0x1aab   :  { %3207 = vrsqrt.f32 %v2303_v42  ;;  %v2304_v38 = vadd.f32 1e-05, %v2302_v25 }
0x1aad   :  { %3209 = vrsqrt.f32 %v2304_v38 }
0x1ab5   :  { %v3208_v50 = vpop.eup %3207 }
0x1ab6   :  { %v2307_v44 = vmul.f32 %v3208_v50, %v2291_v39 }
0x1ab7   :  { %v3210_v46 = vpop.eup %3209 }
0x1ab8   :  { %v2313_v48 = vmul.f32 %v2312_v41, %v2307_v44  ;;  %v2308_v52 = vmul.f32 %v3210_v46, %v2292_v3 }
0x1aba   :  { %v2314_v55 = vmul.f32 %v2312_v41, %v2308_v52  ;;  %v2319_v54 = vadd.f32 %v2318_v53, %v2313_v48 }
0x1abc   :  { %v2320_v34 = vadd.f32 %v2318_v53, %v2314_v55 }
0x1abe   :  { %v2321_v56 = vpack.c.bf16 %v2320_v34, %v2319_v54 }
0x1ac0   :  { %2867 = vmatmul.mubr.msk.bf16.vlgmr.msra.gmra.mrb[36].mxu1 %vm167_vm3, %v2321_v56 }
0x1b93   :  { %v2365_v61 = vpop.f32.mrb[36].mxu1 }
0x1b94   :  { %v2366_v1 = vadd.f32 %v2365_v61, %v2327_v11  ;;  %v2868_v12 = vpop.f32.mrb[37].mxu1 }
0x1b95   :  { %v2368_v13 = vpop.f32.mrb[38].mxu1 }
0x1b96   :  { %v2374_v14 = vmul.f32 0.70710677, %v2366_v1  ;;  %v2369_v8 = vadd.f32 %v2368_v13, %v2327_v11  ;;  %v2869_v15 = vpop.f32.mrb[39].mxu1  ;;  %v2372_v20 = vmul.f32 0.5, %v2366_v1 }
0x1b98   :  { %3211 = verf.f32 %v2374_v14  ;;  %v2375_v16 = vmul.f32 0.70710677, %v2369_v8  ;;  %v2373_v40 = vmul.f32 0.5, %v2369_v8 }
0x1b9a   :  { %3213 = verf.f32 %v2375_v16 }
0x1ba2   :  { %v3212_v17 = vpop.eup %3211 }
0x1ba3   :  { %v2378_v18 = vadd.f32 1.0, %v3212_v17 }
0x1ba4   :  { %v3214_v19 = vpop.eup %3213 }
0x1ba5   :  { %v2379_v23 = vadd.f32 1.0, %v3214_v19  ;;  %v2380_v28 = vmul.f32 %v2378_v18, %v2372_v20 }
0x1ba7   :  { %v2381_v39 = vmul.f32 %v2379_v23, %v2373_v40 }
0x1ba9   :  { %v2382_v29 = vpack.c.bf16 %v2381_v39, %v2380_v28 }
0x1bab   :  { %2879 = vmatmul.mubr.msk.bf16.vlgmr.msra.gmra.mrb[24].mxu0 %vm1229_vm10, %v2382_v29 }
0x1c7e   :  { %v2428_v3 = vpop.f32.mrb[24].mxu0 }
0x1c7f   :  { %v2429_v0 = vadd.f32 %v2428_v3, %v2390_v22  ;;  %v2880_v30 = vpop.f32.mrb[25].mxu0 }
0x1c80   :  { %v2431_v31 = vpop.f32.mrb[26].mxu0 }
0x1c81   :  { %v2432_v35 = vadd.f32 %v2431_v31, %v2390_v22  ;;  %v2881_v36 = vpop.f32.mrb[27].mxu0  ;;  %v2435_v32 = vadd.f32 %v2429_v0, %v2319_v54  ;;  %v2466_v54 = vrot.slane %v3650_v59, %v1304_v21 }
0x1c83   :  { %v2437_v47 = vsel %vm167_vm3, %v2435_v32, 0.0  ;;  %v2436_v33 = vadd.f32 %v2432_v35, %v2320_v34 }
0x1c84   :  { %2438 = vadd.xlane.f32.xlu0 %v2437_v47 }
0x1c85   :  { %v2440_v43 = vsel %vm167_vm3, %v2436_v33, 0.0 }
0x1c86   :  { %2441 = vadd.xlane.f32.xlu1 %v2440_v43 }
0x1d11   :  { %v2439_v37 = vpop.xlane.xlu0 %2438 }
0x1d12   :  { %v2443_v24 = vmul.f32 0.03125, %v2439_v37 }
0x1d13   :  { %v2442_v51 = vpop.xlane.xlu1 %2441 }
0x1d14   :  { %v2445_v26 = vsub.f32 %v2435_v32, %v2443_v24  ;;  %v2444_v42 = vmul.f32 0.03125, %v2442_v51 }
0x1d16   :  { %v2446_v45 = vsub.f32 %v2436_v33, %v2444_v42  ;;  %v2447_v25 = vmul.f32 %v2445_v26, %v2445_v26 }
0x1d18   :  { %v2449_v38 = vsel %vm167_vm3, %v2447_v25, 0.0  ;;  %v2448_v41 = vmul.f32 %v2446_v45, %v2446_v45 }
0x1d19   :  { %2450 = vadd.xlane.f32.xlu0 %v2449_v38 }
0x1d1a   :  { %v2452_v50 = vsel %vm167_vm3, %v2448_v41, 0.0 }
0x1d1b   :  { %2453 = vadd.xlane.f32.xlu1 %v2452_v50 }
0x1da6   :  { %v2451_v44 = vpop.xlane.xlu0 %2450 }
0x1da7   :  { %v2455_v46 = vmul.f32 0.03125, %v2451_v44 }
0x1da8   :  { %v2454_v48 = vpop.xlane.xlu1 %2453 }
0x1da9   :  { %v2457_v52 = vadd.f32 1e-05, %v2455_v46  ;;  %v2456_v53 = vmul.f32 0.03125, %v2454_v48 }
0x1dab   :  { %3215 = vrsqrt.f32 %v2457_v52  ;;  %v2458_v55 = vadd.f32 1e-05, %v2456_v53 }
0x1dad   :  { %3217 = vrsqrt.f32 %v2458_v55 }
0x1db5   :  { %v3216_v34 = vpop.eup %3215 }
0x1db6   :  { %v2461_v56 = vmul.f32 %v3216_v34, %v2445_v26 }
0x1db7   :  { %v3218_v57 = vpop.eup %3217 }
0x1db8   :  { %v2462_v60 = vmul.f32 %v3218_v57, %v2446_v45  ;;  %v2467_v62 = vmul.f32 %v2466_v54, %v2461_v56 }
0x1dba   :  { %v2468_v2 = vmul.f32 %v2466_v54, %v2462_v60  ;;  %v2473_v4 = vadd.f32 %v2472_v58, %v2467_v62 }
0x1dbc   :  { %v2474_v5 = vadd.f32 %v2472_v58, %v2468_v2  ;;  %2475 = vst.msk [vmem:[#allocation2] sm:$0xff] %vm167_vm3, %v2473_v4 }
0x1dbe   :  { %2476 = vst.msk [vmem:[#allocation2 + $0x8] sm:$0xff] %vm167_vm3, %v2474_v5 }
0x1dbf   :  { %3230 = shalt.err (!%p3227_p4)
}
0x1dc0   :  { %s3231_s10 = scalar_lea.hbm %s3878_s3, 256 }
0x1dc1   :  { %p3232_p5 = scmp.ne.s32.totalorder %s3878_s3, %s3231_s10  ;;  %p3235_p6 = scmp.lt.u32.totalorder %s3231_s10, %s3878_s3 }
0x1dc3   :  { %p3237_p7 = pnand %p3235_p6, %p3232_p5 }
0x1dc5   :  { %3240 = shalt.err (!%p3237_p7)
}
0x1dc6   :  { %s3262_s27 = smov 128  }
0x1dc7   :  { %2488 = dma.vmem_to_hbm [thread:$0]  %s2483_s6, 256, %s3878_s3, [#allocation3], %s3262_s27, %s3262_s27, %s3258_s13  }
0x1dc8   :  { %3241 = dma.done.wait [#allocation3], 256  }
0x1dc9   :  { %3242 = vsyncadd [#allocation3], 4294967040 }
0x1dca   :  { %2492 = vsyncpa [#allocation3], 1 }

</bundles_post_ra>
